<compile_context>
chip_gen: v7x
topology: tpu7x:2x2x1
jax: 0.10.0
libtpu: 0.0.40
codegen_flags: <defaults>
</compile_context>

<pallas_src>
import functools

import numpy as np

import jax
import jax.numpy as jnp
from jax.experimental import pallas as pl
from jax.experimental.pallas import tpu as pltpu


# ---------------------------------------------------------------------------
# Fused kernel: one batch sample per grid step, everything in VMEM.
# ---------------------------------------------------------------------------
def _autoencoder_kernel(x_ref, we1_ref, we2_ref, wd1_ref, wd2_ref,
                        wa_ref, wb_ref, m1_ref, m2_ref,
                        o_ref,
                        xg_ref, b1_ref, b2_ref, b3_ref, b4_ref,
                        *, H, W, P, Wp, H1, W1, H2, W2, k1, k2):
    # ---- embed the raw (Cin, H*W) input into the zeroed working grid --------
    xg_ref[...] = jnp.zeros_like(xg_ref)
    xr = x_ref[0]                                   # (Cin, H*W)
    for h in range(H):                              # static unroll, tiny copies
        row = (P + h) * Wp + P
        xg_ref[:, row:row + W] = xr[:, h * W:(h + 1) * W]
    xg = xg_ref[...]                                # (Cin, Hp*Wp)

    dst = P * Wp + P                                # flat offset of block origin
    span1 = (H1 - 1) * Wp + W1                      # enc1 / dec1 output footprint
    span2 = (H2 - 1) * Wp + W2                      # enc2 output footprint
    span4 = (H - 1) * Wp + W                        # dec2 output footprint

    m1 = m1_ref[:, :span1]                          # lane mask: (col % Wp) < W1
    m2 = m2_ref[:, :span2]                          # lane mask: (col % Wp) < W2

    def conv_relu(x_full, w_ref, r0, c0, span, mask):
        """VALID stride-1 conv on the working grid + fused ReLU (+ mask).

        x_full: (Cin, Hp*Wp) value; w_ref: (KH, KW, Cout, Cin) VMEM ref whose
        [kh, kw] slice is the (Cout, Cin) tap matrix.  Each tap is one matmul
        against a shifted column slice of the flat grid (lane-dense).
        """
        KH, KW, cout, _ = w_ref.shape
        acc = jnp.zeros((cout, span), jnp.float32)
        for kh in range(KH):                        # static unroll (k is small)
            for kw in range(KW):
                src = (r0 + kh) * Wp + (c0 + kw)
                acc = acc + jnp.dot(w_ref[kh, kw], x_full[:, src:src + span],
                                    preferred_element_type=jnp.float32)
        acc = jnp.maximum(acc, 0.0)
        if mask is not None:
            acc = acc * mask                        # zero garbage columns
        return acc

    # enc1: Conv2d(k1) + ReLU                    Cin -> C4, valid H1 x W1
    a1 = conv_relu(xg, we1_ref, P, P, span1, m1)
    b1_ref[...] = jnp.zeros_like(b1_ref)
    b1_ref[:, dst:dst + span1] = a1

    # enc2: Conv2d(k2) + ReLU                    C4 -> C16, valid H2 x W2
    a2 = conv_relu(b1_ref[...], we2_ref, P, P, span2, m2)
    b2_ref[...] = jnp.zeros_like(b2_ref)
    b2_ref[:, dst:dst + span2] = a2

    # dec1: ConvTranspose2d(k2) + ReLU  (reads the zero margin -> free padding)
    a3 = conv_relu(b2_ref[...], wd1_ref, P - (k2 - 1), P - (k2 - 1), span1, m1)
    b3_ref[...] = jnp.zeros_like(b3_ref)
    b3_ref[:, dst:dst + span1] = a3

    # dec2: ConvTranspose2d(k1) + ReLU           C4 -> Cout, valid H x W
    a4 = conv_relu(b3_ref[...], wd2_ref, P - (k1 - 1), P - (k1 - 1), span4, None)
    b4_ref[...] = jnp.zeros_like(b4_ref)
    b4_ref[:, dst:dst + span4] = a4

    # cat([x1, origin], ch) + ConvTranspose2d 1x1, folded:
    #   out = Wa @ x1 + Wb @ origin   (pointwise over the working grid)
    out = (jnp.dot(wa_ref[...], b4_ref[...], preferred_element_type=jnp.float32)
           + jnp.dot(wb_ref[...], xg, preferred_element_type=jnp.float32))
    o_ref[0] = out.astype(o_ref.dtype)              # (Cout, Hp*Wp): lane-dense


# ---------------------------------------------------------------------------
# Wrapper: NCHW in / NCHW out, matching the PyTorch module.
# ---------------------------------------------------------------------------
def autoencoder_forward(x_nchw, kparams):
    N, Cin, H, W = x_nchw.shape
    we1, we2 = kparams["enc1"], kparams["enc2"]
    wd1, wd2 = kparams["dec1"], kparams["dec2"]
    wa, wb = kparams["w1x1_a"], kparams["w1x1_b"]
    k1, k2 = int(we1.shape[0]), int(we2.shape[0])
    C4, C16 = int(we1.shape[2]), int(we2.shape[2])
    Cout = int(wa.shape[0])
    assert wb.shape[1] == Cin, "concat + conv1x1 implies output_size == inplance"

    H1, W1 = H - k1 + 1, W - k1 + 1
    H2, W2 = H1 - k2 + 1, W1 - k2 + 1
    assert H2 >= 1 and W2 >= 1
    P = max(k1, k2) - 1                             # zero margin of the grid
    Hp, Wp = H + P, W + P
    FLAT = Hp * Wp

    # Static 0/1 lane masks (precomputed: no int div/mod inside the kernel).
    col = np.arange(FLAT, dtype=np.int64) % Wp
    m1 = jnp.asarray((col < W1).astype(np.float32)).reshape(1, FLAT)
    m2 = jnp.asarray((col < W2).astype(np.float32)).reshape(1, FLAT)

    kernel = functools.partial(
        _autoencoder_kernel,
        H=H, W=W, P=P, Wp=Wp, H1=H1, W1=W1, H2=H2, W2=W2, k1=k1, k2=k2)

    flops = 0
    for (co, ci, k, ho, wo) in ((C4, Cin, k1, H1, W1), (C16, C4, k2, H2, W2),
                                (C4, C16, k2, H1, W1), (Cout, C4, k1, H, W)):
        flops += 2 * co * ci * k * k * ho * wo
    flops += 2 * Cout * (Cout + Cin) * FLAT         # folded concat + 1x1
    flops *= N
    bytes_accessed = 4 * (N * Cin * H * W + N * Cout * FLAT + we1.size
                          + we2.size + wd1.size + wd2.size + wa.size + wb.size
                          + 2 * FLAT)

    x_flat = x_nchw.reshape(N, Cin, H * W)          # free (metadata) reshape

    out_grid = pl.pallas_call(
        kernel,
        out_shape=jax.ShapeDtypeStruct((N, Cout, FLAT), jnp.float32),
        grid=(N,),
        in_specs=[
            pl.BlockSpec((1, Cin, H * W), lambda n: (n, 0, 0)),
            pl.BlockSpec(we1.shape, lambda n: (0, 0, 0, 0)),
            pl.BlockSpec(we2.shape, lambda n: (0, 0, 0, 0)),
            pl.BlockSpec(wd1.shape, lambda n: (0, 0, 0, 0)),
            pl.BlockSpec(wd2.shape, lambda n: (0, 0, 0, 0)),
            pl.BlockSpec(wa.shape, lambda n: (0, 0)),
            pl.BlockSpec(wb.shape, lambda n: (0, 0)),
            pl.BlockSpec((1, FLAT), lambda n: (0, 0)),
            pl.BlockSpec((1, FLAT), lambda n: (0, 0)),
        ],
        out_specs=pl.BlockSpec((1, Cout, FLAT), lambda n: (n, 0, 0)),
        scratch_shapes=[
            pltpu.VMEM((Cin, FLAT), jnp.float32),   # embedded input (working grid)
            pltpu.VMEM((C4, FLAT), jnp.float32),    # enc1 output
            pltpu.VMEM((C16, FLAT), jnp.float32),   # enc2 output
            pltpu.VMEM((C4, FLAT), jnp.float32),    # dec1 output
            pltpu.VMEM((Cout, FLAT), jnp.float32),  # dec2 output
        ],
        compiler_params=pltpu.CompilerParams(
            dimension_semantics=("parallel",)),
        cost_estimate=pl.CostEstimate(flops=int(flops), transcendentals=0,
                                      bytes_accessed=int(bytes_accessed)),
    )(x_flat, we1, we2, wd1, wd2, wa, wb, m1, m2)

    # Extract the valid H x W block of the working grid (tiny XLA slice).
    return out_grid.reshape(N, Cout, Hp, Wp)[:, :, P:P + H, P:P + W]


# ---------------------------------------------------------------------------
# Parameter setup (PyTorch-shaped synthetic weights + conversion to tap layout).
# ---------------------------------------------------------------------------
def init_torch_weights(key, inplance, output_size, k1=3, k2=3):
    assert inplance % 16 == 0 and inplance >= 16
    assert inplance == output_size, "cat + conv1x1 implies output_size == inplance"
    c4, c16 = inplance // 4, inplance // 16
    ks = jax.random.split(key, 5)
    s = 0.1
    return {
        # nn.Conv2d weight: (O, I, kh, kw) ; nn.ConvTranspose2d: (I, O, kh, kw)
        "enc1": jax.random.normal(ks[0], (c4, inplance, k1, k1), jnp.float32) * s,
        "enc2": jax.random.normal(ks[1], (c16, c4, k2, k2), jnp.float32) * s,
        "dec1": jax.random.normal(ks[2], (c16, c4, k2, k2), jnp.float32) * s,
        "dec2": jax.random.normal(ks[3], (c4, output_size, k1, k1), jnp.float32) * s,
        "conv1x1": jax.random.normal(
            ks[4], (2 * output_size, output_size, 1, 1), jnp.float32) * s,
    }


def prepare_pallas_params(tw):
    def conv_taps(w_oihw):          # (O, I, kh, kw) -> (kh, kw, O, I)
        return jnp.transpose(w_oihw, (2, 3, 0, 1))

    def convT_taps(w_iohw):         # stride-1/pad-0 transpose conv == flipped conv
        return jnp.transpose(jnp.flip(w_iohw, axis=(2, 3)), (2, 3, 1, 0))

    m1x1 = jnp.transpose(tw["conv1x1"][:, :, 0, 0], (1, 0))     # (O, 2*O)
    cout = m1x1.shape[0]
    return {
        "enc1": conv_taps(tw["enc1"]),
        "enc2": conv_taps(tw["enc2"]),
        "dec1": convT_taps(tw["dec1"]),
        "dec2": convT_taps(tw["dec2"]),
        "w1x1_a": m1x1[:, :cout],       # multiplies x1 (decoder output)
        "w1x1_b": m1x1[:, cout:],       # multiplies origin (the input)
    }


# ---------------------------------------------------------------------------
# Pure-JAX reference (lax convs, PyTorch-shaped weights) for validation only.
# ---------------------------------------------------------------------------
def _conv_nchw(x, w_oihw):
    return jax.lax.conv_general_dilated(
        x, w_oihw, window_strides=(1, 1), padding="VALID",
        dimension_numbers=("NCHW", "OIHW", "NCHW"))


def _convT_nchw(x, w_iohw):
    kh, kw = int(w_iohw.shape[2]), int(w_iohw.shape[3])
    w = jnp.transpose(jnp.flip(w_iohw, axis=(2, 3)), (1, 0, 2, 3))
    xp = jnp.pad(x, ((0, 0), (0, 0), (kh - 1, kh - 1), (kw - 1, kw - 1)))
    return _conv_nchw(xp, w)


def autoencoder_forward_ref(x, tw):
    origin = x
    x1 = jax.nn.relu(_conv_nchw(x, tw["enc1"]))
    x1 = jax.nn.relu(_conv_nchw(x1, tw["enc2"]))
    x1 = jax.nn.relu(_convT_nchw(x1, tw["dec1"]))
    x1 = jax.nn.relu(_convT_nchw(x1, tw["dec2"]))
    x1 = jnp.concatenate([x1, origin], axis=1)
    return _convT_nchw(x1, tw["conv1x1"])


if __name__ == "__main__":
    # inplance must be >= 16 (inplance // 16 >= 1); cat + conv1x1 implies
    # output_size == inplance.
    N, INPLANCE, OUTPUT_SIZE, H, W = 2, 16, 16, 16, 16

    key = jax.random.PRNGKey(0)
    kx, kparam = jax.random.split(key)
    x = jax.random.normal(kx, (N, INPLANCE, H, W), jnp.float32)
    torch_w = init_torch_weights(kparam, INPLANCE, OUTPUT_SIZE, k1=3, k2=3)
    kparams = prepare_pallas_params(torch_w)

    fwd = jax.jit(autoencoder_forward)
    out = jax.block_until_ready(fwd(x, kparams))
    assert out.shape == (N, OUTPUT_SIZE, H, W), out.shape

    ref = jax.block_until_ready(autoencoder_forward_ref(x, torch_w))
    assert jnp.allclose(out, ref, atol=1e-3, rtol=1e-3), (
        "mismatch vs reference, max abs err = %g"
        % float(jnp.max(jnp.abs(out - ref))))

    print("KERNEL_OK")
</pallas_src>

<mosaic_0001>
module attributes {stable_mosaic.version = 11 : i64} {
  func.func @_autoencoder_kernel(%arg0: i32, %arg1: memref<1x16x256xf32, #tpu.memory_space<vmem>>, %arg2: memref<3x3x4x16xf32, #tpu.memory_space<vmem>>, %arg3: memref<3x3x1x4xf32, #tpu.memory_space<vmem>>, %arg4: memref<3x3x4x1xf32, #tpu.memory_space<vmem>>, %arg5: memref<3x3x16x4xf32, #tpu.memory_space<vmem>>, %arg6: memref<16x16xf32, #tpu.memory_space<vmem>>, %arg7: memref<16x16xf32, #tpu.memory_space<vmem>>, %arg8: memref<1x324xf32, #tpu.memory_space<vmem>>, %arg9: memref<1x324xf32, #tpu.memory_space<vmem>>, %arg10: memref<1x16x324xf32, #tpu.memory_space<vmem>>, %arg11: memref<16x324xf32, #tpu.memory_space<vmem>>, %arg12: memref<4x324xf32, #tpu.memory_space<vmem>>, %arg13: memref<1x324xf32, #tpu.memory_space<vmem>>, %arg14: memref<4x324xf32, #tpu.memory_space<vmem>>, %arg15: memref<16x324xf32, #tpu.memory_space<vmem>>) attributes {dimension_semantics = [#tpu.dimension_semantics<parallel>], iteration_bounds = array<i64: 2>, scalar_prefetch = 0 : i64, scratch_operands = 5 : i64, tpu.core_type = #tpu.core_type<tc>, window_params = [{transform_indices = @transform_0, window_bounds = array<i64: 1, 16, 256>}, {pipeline_mode = #tpu.pipeline_mode<synchronous>, transform_indices = @transform_1, window_bounds = array<i64: 3, 3, 4, 16>}, {pipeline_mode = #tpu.pipeline_mode<synchronous>, transform_indices = @transform_2, window_bounds = array<i64: 3, 3, 1, 4>}, {pipeline_mode = #tpu.pipeline_mode<synchronous>, transform_indices = @transform_3, window_bounds = array<i64: 3, 3, 4, 1>}, {pipeline_mode = #tpu.pipeline_mode<synchronous>, transform_indices = @transform_4, window_bounds = array<i64: 3, 3, 16, 4>}, {pipeline_mode = #tpu.pipeline_mode<synchronous>, transform_indices = @transform_5, window_bounds = array<i64: 16, 16>}, {pipeline_mode = #tpu.pipeline_mode<synchronous>, transform_indices = @transform_6, window_bounds = array<i64: 16, 16>}, {pipeline_mode = #tpu.pipeline_mode<synchronous>, transform_indices = @transform_7, window_bounds = array<i64: 1, 324>}, {pipeline_mode = #tpu.pipeline_mode<synchronous>, transform_indices = @transform_8, window_bounds = array<i64: 1, 324>}, {transform_indices = @transform_9, window_bounds = array<i64: 1, 16, 324>}]} {
    %cst = arith.constant 0.000000e+00 : f32
    %0 = vector.broadcast %cst : f32 to vector<16x324xf32>
    %c0 = arith.constant 0 : index
    %c0_0 = arith.constant 0 : index
    %1 = vector.load %arg11[%c0, %c0_0] : memref<16x324xf32, #tpu.memory_space<vmem>>, vector<16x324xf32>
    tpu.vector_store %arg11[%c0, %c0_0], %0 {strides = array<i32>} : memref<16x324xf32, #tpu.memory_space<vmem>>, vector<16x324xf32>,
    %c0_1 = arith.constant 0 : index
    %c0_2 = arith.constant 0 : index
    %c0_3 = arith.constant 0 : index
    %2 = vector.load %arg1[%c0_1, %c0_2, %c0_3] : memref<1x16x256xf32, #tpu.memory_space<vmem>>, vector<1x16x256xf32>
    %3 = vector.shape_cast %2 : vector<1x16x256xf32> to vector<16x256xf32>
    %4 = vector.extract_strided_slice %3 {offsets = [0, 0], sizes = [16, 16], strides = [1, 1]} : vector<16x256xf32> to vector<16x16xf32>
    %c0_4 = arith.constant 0 : index
    %c38 = arith.constant 38 : index
    %5 = vector.load %arg11[%c0_4, %c38] : memref<16x324xf32, #tpu.memory_space<vmem>>, vector<16x16xf32>
    tpu.vector_store %arg11[%c0_4, %c38], %4 {strides = array<i32>} : memref<16x324xf32, #tpu.memory_space<vmem>>, vector<16x16xf32>,
    %6 = vector.extract_strided_slice %3 {offsets = [0, 16], sizes = [16, 16], strides = [1, 1]} : vector<16x256xf32> to vector<16x16xf32>
    %c0_5 = arith.constant 0 : index
    %c56 = arith.constant 56 : index
    %7 = vector.load %arg11[%c0_5, %c56] : memref<16x324xf32, #tpu.memory_space<vmem>>, vector<16x16xf32>
    tpu.vector_store %arg11[%c0_5, %c56], %6 {strides = array<i32>} : memref<16x324xf32, #tpu.memory_space<vmem>>, vector<16x16xf32>,
    %8 = vector.extract_strided_slice %3 {offsets = [0, 32], sizes = [16, 16], strides = [1, 1]} : vector<16x256xf32> to vector<16x16xf32>
    %c0_6 = arith.constant 0 : index
    %c74 = arith.constant 74 : index
    %9 = vector.load %arg11[%c0_6, %c74] : memref<16x324xf32, #tpu.memory_space<vmem>>, vector<16x16xf32>
    tpu.vector_store %arg11[%c0_6, %c74], %8 {strides = array<i32>} : memref<16x324xf32, #tpu.memory_space<vmem>>, vector<16x16xf32>,
    %10 = vector.extract_strided_slice %3 {offsets = [0, 48], sizes = [16, 16], strides = [1, 1]} : vector<16x256xf32> to vector<16x16xf32>
    %c0_7 = arith.constant 0 : index
    %c92 = arith.constant 92 : index
    %11 = vector.load %arg11[%c0_7, %c92] : memref<16x324xf32, #tpu.memory_space<vmem>>, vector<16x16xf32>
    tpu.vector_store %arg11[%c0_7, %c92], %10 {strides = array<i32>} : memref<16x324xf32, #tpu.memory_space<vmem>>, vector<16x16xf32>,
    %12 = vector.extract_strided_slice %3 {offsets = [0, 64], sizes = [16, 16], strides = [1, 1]} : vector<16x256xf32> to vector<16x16xf32>
    %c0_8 = arith.constant 0 : index
    %c110 = arith.constant 110 : index
    %13 = vector.load %arg11[%c0_8, %c110] : memref<16x324xf32, #tpu.memory_space<vmem>>, vector<16x16xf32>
    tpu.vector_store %arg11[%c0_8, %c110], %12 {strides = array<i32>} : memref<16x324xf32, #tpu.memory_space<vmem>>, vector<16x16xf32>,
    %14 = vector.extract_strided_slice %3 {offsets = [0, 80], sizes = [16, 16], strides = [1, 1]} : vector<16x256xf32> to vector<16x16xf32>
    %c0_9 = arith.constant 0 : index
    %c128 = arith.constant 128 : index
    %15 = vector.load %arg11[%c0_9, %c128] : memref<16x324xf32, #tpu.memory_space<vmem>>, vector<16x16xf32>
    tpu.vector_store %arg11[%c0_9, %c128], %14 {strides = array<i32>} : memref<16x324xf32, #tpu.memory_space<vmem>>, vector<16x16xf32>,
    %16 = vector.extract_strided_slice %3 {offsets = [0, 96], sizes = [16, 16], strides = [1, 1]} : vector<16x256xf32> to vector<16x16xf32>
    %c0_10 = arith.constant 0 : index
    %c146 = arith.constant 146 : index
    %17 = vector.load %arg11[%c0_10, %c146] : memref<16x324xf32, #tpu.memory_space<vmem>>, vector<16x16xf32>
    tpu.vector_store %arg11[%c0_10, %c146], %16 {strides = array<i32>} : memref<16x324xf32, #tpu.memory_space<vmem>>, vector<16x16xf32>,
    %18 = vector.extract_strided_slice %3 {offsets = [0, 112], sizes = [16, 16], strides = [1, 1]} : vector<16x256xf32> to vector<16x16xf32>
    %c0_11 = arith.constant 0 : index
    %c164 = arith.constant 164 : index
    %19 = vector.load %arg11[%c0_11, %c164] : memref<16x324xf32, #tpu.memory_space<vmem>>, vector<16x16xf32>
    tpu.vector_store %arg11[%c0_11, %c164], %18 {strides = array<i32>} : memref<16x324xf32, #tpu.memory_space<vmem>>, vector<16x16xf32>,
    %20 = vector.extract_strided_slice %3 {offsets = [0, 128], sizes = [16, 16], strides = [1, 1]} : vector<16x256xf32> to vector<16x16xf32>
    %c0_12 = arith.constant 0 : index
    %c182 = arith.constant 182 : index
    %21 = vector.load %arg11[%c0_12, %c182] : memref<16x324xf32, #tpu.memory_space<vmem>>, vector<16x16xf32>
    tpu.vector_store %arg11[%c0_12, %c182], %20 {strides = array<i32>} : memref<16x324xf32, #tpu.memory_space<vmem>>, vector<16x16xf32>,
    %22 = vector.extract_strided_slice %3 {offsets = [0, 144], sizes = [16, 16], strides = [1, 1]} : vector<16x256xf32> to vector<16x16xf32>
    %c0_13 = arith.constant 0 : index
    %c200 = arith.constant 200 : index
    %23 = vector.load %arg11[%c0_13, %c200] : memref<16x324xf32, #tpu.memory_space<vmem>>, vector<16x16xf32>
    tpu.vector_store %arg11[%c0_13, %c200], %22 {strides = array<i32>} : memref<16x324xf32, #tpu.memory_space<vmem>>, vector<16x16xf32>,
    %24 = vector.extract_strided_slice %3 {offsets = [0, 160], sizes = [16, 16], strides = [1, 1]} : vector<16x256xf32> to vector<16x16xf32>
    %c0_14 = arith.constant 0 : index
    %c218 = arith.constant 218 : index
    %25 = vector.load %arg11[%c0_14, %c218] : memref<16x324xf32, #tpu.memory_space<vmem>>, vector<16x16xf32>
    tpu.vector_store %arg11[%c0_14, %c218], %24 {strides = array<i32>} : memref<16x324xf32, #tpu.memory_space<vmem>>, vector<16x16xf32>,
    %26 = vector.extract_strided_slice %3 {offsets = [0, 176], sizes = [16, 16], strides = [1, 1]} : vector<16x256xf32> to vector<16x16xf32>
    %c0_15 = arith.constant 0 : index
    %c236 = arith.constant 236 : index
    %27 = vector.load %arg11[%c0_15, %c236] : memref<16x324xf32, #tpu.memory_space<vmem>>, vector<16x16xf32>
    tpu.vector_store %arg11[%c0_15, %c236], %26 {strides = array<i32>} : memref<16x324xf32, #tpu.memory_space<vmem>>, vector<16x16xf32>,
    %28 = vector.extract_strided_slice %3 {offsets = [0, 192], sizes = [16, 16], strides = [1, 1]} : vector<16x256xf32> to vector<16x16xf32>
    %c0_16 = arith.constant 0 : index
    %c254 = arith.constant 254 : index
    %29 = vector.load %arg11[%c0_16, %c254] : memref<16x324xf32, #tpu.memory_space<vmem>>, vector<16x16xf32>
    tpu.vector_store %arg11[%c0_16, %c254], %28 {strides = array<i32>} : memref<16x324xf32, #tpu.memory_space<vmem>>, vector<16x16xf32>,
    %30 = vector.extract_strided_slice %3 {offsets = [0, 208], sizes = [16, 16], strides = [1, 1]} : vector<16x256xf32> to vector<16x16xf32>
    %c0_17 = arith.constant 0 : index
    %c272 = arith.constant 272 : index
    %31 = vector.load %arg11[%c0_17, %c272] : memref<16x324xf32, #tpu.memory_space<vmem>>, vector<16x16xf32>
    tpu.vector_store %arg11[%c0_17, %c272], %30 {strides = array<i32>} : memref<16x324xf32, #tpu.memory_space<vmem>>, vector<16x16xf32>,
    %32 = vector.extract_strided_slice %3 {offsets = [0, 224], sizes = [16, 16], strides = [1, 1]} : vector<16x256xf32> to vector<16x16xf32>
    %c0_18 = arith.constant 0 : index
    %c290 = arith.constant 290 : index
    %33 = vector.load %arg11[%c0_18, %c290] : memref<16x324xf32, #tpu.memory_space<vmem>>, vector<16x16xf32>
    tpu.vector_store %arg11[%c0_18, %c290], %32 {strides = array<i32>} : memref<16x324xf32, #tpu.memory_space<vmem>>, vector<16x16xf32>,
    %34 = vector.extract_strided_slice %3 {offsets = [0, 240], sizes = [16, 16], strides = [1, 1]} : vector<16x256xf32> to vector<16x16xf32>
    %c0_19 = arith.constant 0 : index
    %c308 = arith.constant 308 : index
    %35 = vector.load %arg11[%c0_19, %c308] : memref<16x324xf32, #tpu.memory_space<vmem>>, vector<16x16xf32>
    tpu.vector_store %arg11[%c0_19, %c308], %34 {strides = array<i32>} : memref<16x324xf32, #tpu.memory_space<vmem>>, vector<16x16xf32>,
    %c0_20 = arith.constant 0 : index
    %c0_21 = arith.constant 0 : index
    %36 = vector.load %arg11[%c0_20, %c0_21] : memref<16x324xf32, #tpu.memory_space<vmem>>, vector<16x324xf32>
    %c0_22 = arith.constant 0 : index
    %c0_23 = arith.constant 0 : index
    %37 = vector.load %arg8[%c0_22, %c0_23] : memref<1x324xf32, #tpu.memory_space<vmem>>, vector<1x248xf32>
    %c0_24 = arith.constant 0 : index
    %c0_25 = arith.constant 0 : index
    %38 = vector.load %arg9[%c0_24, %c0_25] : memref<1x324xf32, #tpu.memory_space<vmem>>, vector<1x210xf32>
    %cst_26 = arith.constant 0.000000e+00 : f32
    %39 = vector.broadcast %cst_26 : f32 to vector<4x248xf32>
    %c0_27 = arith.constant 0 : index
    %c0_28 = arith.constant 0 : index
    %c0_29 = arith.constant 0 : index
    %c0_30 = arith.constant 0 : index
    %40 = vector.load %arg2[%c0_27, %c0_28, %c0_29, %c0_30] : memref<3x3x4x16xf32, #tpu.memory_space<vmem>>, vector<1x1x4x16xf32>
    %41 = vector.shape_cast %40 : vector<1x1x4x16xf32> to vector<4x16xf32>
    %42 = vector.extract_strided_slice %36 {offsets = [0, 38], sizes = [16, 248], strides = [1, 1]} : vector<16x324xf32> to vector<16x248xf32>
    %cst_31 = arith.constant dense<0.000000e+00> : vector<4x248xf32>
    %43 = tpu.matmul %41, %42, %cst_31 {dimension_numbers = #tpu.dot_dimension_numbers<[1], [0], [0], [1], [0, 0, 1, 1], [], []>} : vector<4x16xf32>, vector<16x248xf32>, vector<4x248xf32> -> vector<4x248xf32>
    %44 = arith.addf %39, %43 : vector<4x248xf32>
    %c0_32 = arith.constant 0 : index
    %c1 = arith.constant 1 : index
    %c0_33 = arith.constant 0 : index
    %c0_34 = arith.constant 0 : index
    %45 = vector.load %arg2[%c0_32, %c1, %c0_33, %c0_34] : memref<3x3x4x16xf32, #tpu.memory_space<vmem>>, vector<1x1x4x16xf32>
    %46 = vector.shape_cast %45 : vector<1x1x4x16xf32> to vector<4x16xf32>
    %47 = vector.extract_strided_slice %36 {offsets = [0, 39], sizes = [16, 248], strides = [1, 1]} : vector<16x324xf32> to vector<16x248xf32>
    %cst_35 = arith.constant dense<0.000000e+00> : vector<4x248xf32>
    %48 = tpu.matmul %46, %47, %cst_35 {dimension_numbers = #tpu.dot_dimension_numbers<[1], [0], [0], [1], [0, 0, 1, 1], [], []>} : vector<4x16xf32>, vector<16x248xf32>, vector<4x248xf32> -> vector<4x248xf32>
    %49 = arith.addf %44, %48 : vector<4x248xf32>
    %c0_36 = arith.constant 0 : index
    %c2 = arith.constant 2 : index
    %c0_37 = arith.constant 0 : index
    %c0_38 = arith.constant 0 : index
    %50 = vector.load %arg2[%c0_36, %c2, %c0_37, %c0_38] : memref<3x3x4x16xf32, #tpu.memory_space<vmem>>, vector<1x1x4x16xf32>
    %51 = vector.shape_cast %50 : vector<1x1x4x16xf32> to vector<4x16xf32>
    %52 = vector.extract_strided_slice %36 {offsets = [0, 40], sizes = [16, 248], strides = [1, 1]} : vector<16x324xf32> to vector<16x248xf32>
    %cst_39 = arith.constant dense<0.000000e+00> : vector<4x248xf32>
    %53 = tpu.matmul %51, %52, %cst_39 {dimension_numbers = #tpu.dot_dimension_numbers<[1], [0], [0], [1], [0, 0, 1, 1], [], []>} : vector<4x16xf32>, vector<16x248xf32>, vector<4x248xf32> -> vector<4x248xf32>
    %54 = arith.addf %49, %53 : vector<4x248xf32>
    %c1_40 = arith.constant 1 : index
    %c0_41 = arith.constant 0 : index
    %c0_42 = arith.constant 0 : index
    %c0_43 = arith.constant 0 : index
    %55 = vector.load %arg2[%c1_40, %c0_41, %c0_42, %c0_43] : memref<3x3x4x16xf32, #tpu.memory_space<vmem>>, vector<1x1x4x16xf32>
    %56 = vector.shape_cast %55 : vector<1x1x4x16xf32> to vector<4x16xf32>
    %57 = vector.extract_strided_slice %36 {offsets = [0, 56], sizes = [16, 248], strides = [1, 1]} : vector<16x324xf32> to vector<16x248xf32>
    %cst_44 = arith.constant dense<0.000000e+00> : vector<4x248xf32>
    %58 = tpu.matmul %56, %57, %cst_44 {dimension_numbers = #tpu.dot_dimension_numbers<[1], [0], [0], [1], [0, 0, 1, 1], [], []>} : vector<4x16xf32>, vector<16x248xf32>, vector<4x248xf32> -> vector<4x248xf32>
    %59 = arith.addf %54, %58 : vector<4x248xf32>
    %c1_45 = arith.constant 1 : index
    %c1_46 = arith.constant 1 : index
    %c0_47 = arith.constant 0 : index
    %c0_48 = arith.constant 0 : index
    %60 = vector.load %arg2[%c1_45, %c1_46, %c0_47, %c0_48] : memref<3x3x4x16xf32, #tpu.memory_space<vmem>>, vector<1x1x4x16xf32>
    %61 = vector.shape_cast %60 : vector<1x1x4x16xf32> to vector<4x16xf32>
    %62 = vector.extract_strided_slice %36 {offsets = [0, 57], sizes = [16, 248], strides = [1, 1]} : vector<16x324xf32> to vector<16x248xf32>
    %cst_49 = arith.constant dense<0.000000e+00> : vector<4x248xf32>
    %63 = tpu.matmul %61, %62, %cst_49 {dimension_numbers = #tpu.dot_dimension_numbers<[1], [0], [0], [1], [0, 0, 1, 1], [], []>} : vector<4x16xf32>, vector<16x248xf32>, vector<4x248xf32> -> vector<4x248xf32>
    %64 = arith.addf %59, %63 : vector<4x248xf32>
    %c1_50 = arith.constant 1 : index
    %c2_51 = arith.constant 2 : index
    %c0_52 = arith.constant 0 : index
    %c0_53 = arith.constant 0 : index
    %65 = vector.load %arg2[%c1_50, %c2_51, %c0_52, %c0_53] : memref<3x3x4x16xf32, #tpu.memory_space<vmem>>, vector<1x1x4x16xf32>
    %66 = vector.shape_cast %65 : vector<1x1x4x16xf32> to vector<4x16xf32>
    %67 = vector.extract_strided_slice %36 {offsets = [0, 58], sizes = [16, 248], strides = [1, 1]} : vector<16x324xf32> to vector<16x248xf32>
    %cst_54 = arith.constant dense<0.000000e+00> : vector<4x248xf32>
    %68 = tpu.matmul %66, %67, %cst_54 {dimension_numbers = #tpu.dot_dimension_numbers<[1], [0], [0], [1], [0, 0, 1, 1], [], []>} : vector<4x16xf32>, vector<16x248xf32>, vector<4x248xf32> -> vector<4x248xf32>
    %69 = arith.addf %64, %68 : vector<4x248xf32>
    %c2_55 = arith.constant 2 : index
    %c0_56 = arith.constant 0 : index
    %c0_57 = arith.constant 0 : index
    %c0_58 = arith.constant 0 : index
    %70 = vector.load %arg2[%c2_55, %c0_56, %c0_57, %c0_58] : memref<3x3x4x16xf32, #tpu.memory_space<vmem>>, vector<1x1x4x16xf32>
    %71 = vector.shape_cast %70 : vector<1x1x4x16xf32> to vector<4x16xf32>
    %72 = vector.extract_strided_slice %36 {offsets = [0, 74], sizes = [16, 248], strides = [1, 1]} : vector<16x324xf32> to vector<16x248xf32>
    %cst_59 = arith.constant dense<0.000000e+00> : vector<4x248xf32>
    %73 = tpu.matmul %71, %72, %cst_59 {dimension_numbers = #tpu.dot_dimension_numbers<[1], [0], [0], [1], [0, 0, 1, 1], [], []>} : vector<4x16xf32>, vector<16x248xf32>, vector<4x248xf32> -> vector<4x248xf32>
    %74 = arith.addf %69, %73 : vector<4x248xf32>
    %c2_60 = arith.constant 2 : index
    %c1_61 = arith.constant 1 : index
    %c0_62 = arith.constant 0 : index
    %c0_63 = arith.constant 0 : index
    %75 = vector.load %arg2[%c2_60, %c1_61, %c0_62, %c0_63] : memref<3x3x4x16xf32, #tpu.memory_space<vmem>>, vector<1x1x4x16xf32>
    %76 = vector.shape_cast %75 : vector<1x1x4x16xf32> to vector<4x16xf32>
    %77 = vector.extract_strided_slice %36 {offsets = [0, 75], sizes = [16, 248], strides = [1, 1]} : vector<16x324xf32> to vector<16x248xf32>
    %cst_64 = arith.constant dense<0.000000e+00> : vector<4x248xf32>
    %78 = tpu.matmul %76, %77, %cst_64 {dimension_numbers = #tpu.dot_dimension_numbers<[1], [0], [0], [1], [0, 0, 1, 1], [], []>} : vector<4x16xf32>, vector<16x248xf32>, vector<4x248xf32> -> vector<4x248xf32>
    %79 = arith.addf %74, %78 : vector<4x248xf32>
    %c2_65 = arith.constant 2 : index
    %c2_66 = arith.constant 2 : index
    %c0_67 = arith.constant 0 : index
    %c0_68 = arith.constant 0 : index
    %80 = vector.load %arg2[%c2_65, %c2_66, %c0_67, %c0_68] : memref<3x3x4x16xf32, #tpu.memory_space<vmem>>, vector<1x1x4x16xf32>
    %81 = vector.shape_cast %80 : vector<1x1x4x16xf32> to vector<4x16xf32>
    %82 = vector.extract_strided_slice %36 {offsets = [0, 76], sizes = [16, 248], strides = [1, 1]} : vector<16x324xf32> to vector<16x248xf32>
    %cst_69 = arith.constant dense<0.000000e+00> : vector<4x248xf32>
    %83 = tpu.matmul %81, %82, %cst_69 {dimension_numbers = #tpu.dot_dimension_numbers<[1], [0], [0], [1], [0, 0, 1, 1], [], []>} : vector<4x16xf32>, vector<16x248xf32>, vector<4x248xf32> -> vector<4x248xf32>
    %84 = arith.addf %79, %83 : vector<4x248xf32>
    %cst_70 = arith.constant 0.000000e+00 : f32
    %85 = vector.broadcast %cst_70 : f32 to vector<4x248xf32>
    %86 = arith.maximumf %84, %85 : vector<4x248xf32>
    %87 = vector.broadcast %37 : vector<1x248xf32> to vector<4x248xf32>
    %88 = arith.mulf %86, %87 : vector<4x248xf32>
    %cst_71 = arith.constant 0.000000e+00 : f32
    %89 = vector.broadcast %cst_71 : f32 to vector<4x324xf32>
    %c0_72 = arith.constant 0 : index
    %c0_73 = arith.constant 0 : index
    %90 = vector.load %arg12[%c0_72, %c0_73] : memref<4x324xf32, #tpu.memory_space<vmem>>, vector<4x324xf32>
    tpu.vector_store %arg12[%c0_72, %c0_73], %89 {strides = array<i32>} : memref<4x324xf32, #tpu.memory_space<vmem>>, vector<4x324xf32>,
    %c0_74 = arith.constant 0 : index
    %c38_75 = arith.constant 38 : index
    %91 = vector.load %arg12[%c0_74, %c38_75] : memref<4x324xf32, #tpu.memory_space<vmem>>, vector<4x248xf32>
    tpu.vector_store %arg12[%c0_74, %c38_75], %88 {strides = array<i32>} : memref<4x324xf32, #tpu.memory_space<vmem>>, vector<4x248xf32>,
    %c0_76 = arith.constant 0 : index
    %c0_77 = arith.constant 0 : index
    %92 = vector.load %arg12[%c0_76, %c0_77] : memref<4x324xf32, #tpu.memory_space<vmem>>, vector<4x324xf32>
    %cst_78 = arith.constant 0.000000e+00 : f32
    %93 = vector.broadcast %cst_78 : f32 to vector<1x210xf32>
    %c0_79 = arith.constant 0 : index
    %c0_80 = arith.constant 0 : index
    %c0_81 = arith.constant 0 : index
    %c0_82 = arith.constant 0 : index
    %94 = vector.load %arg3[%c0_79, %c0_80, %c0_81, %c0_82] : memref<3x3x1x4xf32, #tpu.memory_space<vmem>>, vector<1x1x1x4xf32>
    %95 = vector.shape_cast %94 : vector<1x1x1x4xf32> to vector<1x4xf32>
    %96 = vector.extract_strided_slice %92 {offsets = [0, 38], sizes = [4, 210], strides = [1, 1]} : vector<4x324xf32> to vector<4x210xf32>
    %cst_83 = arith.constant dense<0.000000e+00> : vector<1x210xf32>
    %97 = tpu.matmul %95, %96, %cst_83 {dimension_numbers = #tpu.dot_dimension_numbers<[1], [0], [0], [1], [0, 0, 1, 1], [], []>} : vector<1x4xf32>, vector<4x210xf32>, vector<1x210xf32> -> vector<1x210xf32>
    %98 = arith.addf %93, %97 : vector<1x210xf32>
    %c0_84 = arith.constant 0 : index
    %c1_85 = arith.constant 1 : index
    %c0_86 = arith.constant 0 : index
    %c0_87 = arith.constant 0 : index
    %99 = vector.load %arg3[%c0_84, %c1_85, %c0_86, %c0_87] : memref<3x3x1x4xf32, #tpu.memory_space<vmem>>, vector<1x1x1x4xf32>
    %100 = vector.shape_cast %99 : vector<1x1x1x4xf32> to vector<1x4xf32>
    %101 = vector.extract_strided_slice %92 {offsets = [0, 39], sizes = [4, 210], strides = [1, 1]} : vector<4x324xf32> to vector<4x210xf32>
    %cst_88 = arith.constant dense<0.000000e+00> : vector<1x210xf32>
    %102 = tpu.matmul %100, %101, %cst_88 {dimension_numbers = #tpu.dot_dimension_numbers<[1], [0], [0], [1], [0, 0, 1, 1], [], []>} : vector<1x4xf32>, vector<4x210xf32>, vector<1x210xf32> -> vector<1x210xf32>
    %103 = arith.addf %98, %102 : vector<1x210xf32>
    %c0_89 = arith.constant 0 : index
    %c2_90 = arith.constant 2 : index
    %c0_91 = arith.constant 0 : index
    %c0_92 = arith.constant 0 : index
    %104 = vector.load %arg3[%c0_89, %c2_90, %c0_91, %c0_92] : memref<3x3x1x4xf32, #tpu.memory_space<vmem>>, vector<1x1x1x4xf32>
    %105 = vector.shape_cast %104 : vector<1x1x1x4xf32> to vector<1x4xf32>
    %106 = vector.extract_strided_slice %92 {offsets = [0, 40], sizes = [4, 210], strides = [1, 1]} : vector<4x324xf32> to vector<4x210xf32>
    %cst_93 = arith.constant dense<0.000000e+00> : vector<1x210xf32>
    %107 = tpu.matmul %105, %106, %cst_93 {dimension_numbers = #tpu.dot_dimension_numbers<[1], [0], [0], [1], [0, 0, 1, 1], [], []>} : vector<1x4xf32>, vector<4x210xf32>, vector<1x210xf32> -> vector<1x210xf32>
    %108 = arith.addf %103, %107 : vector<1x210xf32>
    %c1_94 = arith.constant 1 : index
    %c0_95 = arith.constant 0 : index
    %c0_96 = arith.constant 0 : index
    %c0_97 = arith.constant 0 : index
    %109 = vector.load %arg3[%c1_94, %c0_95, %c0_96, %c0_97] : memref<3x3x1x4xf32, #tpu.memory_space<vmem>>, vector<1x1x1x4xf32>
    %110 = vector.shape_cast %109 : vector<1x1x1x4xf32> to vector<1x4xf32>
    %111 = vector.extract_strided_slice %92 {offsets = [0, 56], sizes = [4, 210], strides = [1, 1]} : vector<4x324xf32> to vector<4x210xf32>
    %cst_98 = arith.constant dense<0.000000e+00> : vector<1x210xf32>
    %112 = tpu.matmul %110, %111, %cst_98 {dimension_numbers = #tpu.dot_dimension_numbers<[1], [0], [0], [1], [0, 0, 1, 1], [], []>} : vector<1x4xf32>, vector<4x210xf32>, vector<1x210xf32> -> vector<1x210xf32>
    %113 = arith.addf %108, %112 : vector<1x210xf32>
    %c1_99 = arith.constant 1 : index
    %c1_100 = arith.constant 1 : index
    %c0_101 = arith.constant 0 : index
    %c0_102 = arith.constant 0 : index
    %114 = vector.load %arg3[%c1_99, %c1_100, %c0_101, %c0_102] : memref<3x3x1x4xf32, #tpu.memory_space<vmem>>, vector<1x1x1x4xf32>
    %115 = vector.shape_cast %114 : vector<1x1x1x4xf32> to vector<1x4xf32>
    %116 = vector.extract_strided_slice %92 {offsets = [0, 57], sizes = [4, 210], strides = [1, 1]} : vector<4x324xf32> to vector<4x210xf32>
    %cst_103 = arith.constant dense<0.000000e+00> : vector<1x210xf32>
    %117 = tpu.matmul %115, %116, %cst_103 {dimension_numbers = #tpu.dot_dimension_numbers<[1], [0], [0], [1], [0, 0, 1, 1], [], []>} : vector<1x4xf32>, vector<4x210xf32>, vector<1x210xf32> -> vector<1x210xf32>
    %118 = arith.addf %113, %117 : vector<1x210xf32>
    %c1_104 = arith.constant 1 : index
    %c2_105 = arith.constant 2 : index
    %c0_106 = arith.constant 0 : index
    %c0_107 = arith.constant 0 : index
    %119 = vector.load %arg3[%c1_104, %c2_105, %c0_106, %c0_107] : memref<3x3x1x4xf32, #tpu.memory_space<vmem>>, vector<1x1x1x4xf32>
    %120 = vector.shape_cast %119 : vector<1x1x1x4xf32> to vector<1x4xf32>
    %121 = vector.extract_strided_slice %92 {offsets = [0, 58], sizes = [4, 210], strides = [1, 1]} : vector<4x324xf32> to vector<4x210xf32>
    %cst_108 = arith.constant dense<0.000000e+00> : vector<1x210xf32>
    %122 = tpu.matmul %120, %121, %cst_108 {dimension_numbers = #tpu.dot_dimension_numbers<[1], [0], [0], [1], [0, 0, 1, 1], [], []>} : vector<1x4xf32>, vector<4x210xf32>, vector<1x210xf32> -> vector<1x210xf32>
    %123 = arith.addf %118, %122 : vector<1x210xf32>
    %c2_109 = arith.constant 2 : index
    %c0_110 = arith.constant 0 : index
    %c0_111 = arith.constant 0 : index
    %c0_112 = arith.constant 0 : index
    %124 = vector.load %arg3[%c2_109, %c0_110, %c0_111, %c0_112] : memref<3x3x1x4xf32, #tpu.memory_space<vmem>>, vector<1x1x1x4xf32>
    %125 = vector.shape_cast %124 : vector<1x1x1x4xf32> to vector<1x4xf32>
    %126 = vector.extract_strided_slice %92 {offsets = [0, 74], sizes = [4, 210], strides = [1, 1]} : vector<4x324xf32> to vector<4x210xf32>
    %cst_113 = arith.constant dense<0.000000e+00> : vector<1x210xf32>
    %127 = tpu.matmul %125, %126, %cst_113 {dimension_numbers = #tpu.dot_dimension_numbers<[1], [0], [0], [1], [0, 0, 1, 1], [], []>} : vector<1x4xf32>, vector<4x210xf32>, vector<1x210xf32> -> vector<1x210xf32>
    %128 = arith.addf %123, %127 : vector<1x210xf32>
    %c2_114 = arith.constant 2 : index
    %c1_115 = arith.constant 1 : index
    %c0_116 = arith.constant 0 : index
    %c0_117 = arith.constant 0 : index
    %129 = vector.load %arg3[%c2_114, %c1_115, %c0_116, %c0_117] : memref<3x3x1x4xf32, #tpu.memory_space<vmem>>, vector<1x1x1x4xf32>
    %130 = vector.shape_cast %129 : vector<1x1x1x4xf32> to vector<1x4xf32>
    %131 = vector.extract_strided_slice %92 {offsets = [0, 75], sizes = [4, 210], strides = [1, 1]} : vector<4x324xf32> to vector<4x210xf32>
    %cst_118 = arith.constant dense<0.000000e+00> : vector<1x210xf32>
    %132 = tpu.matmul %130, %131, %cst_118 {dimension_numbers = #tpu.dot_dimension_numbers<[1], [0], [0], [1], [0, 0, 1, 1], [], []>} : vector<1x4xf32>, vector<4x210xf32>, vector<1x210xf32> -> vector<1x210xf32>
    %133 = arith.addf %128, %132 : vector<1x210xf32>
    %c2_119 = arith.constant 2 : index
    %c2_120 = arith.constant 2 : index
    %c0_121 = arith.constant 0 : index
    %c0_122 = arith.constant 0 : index
    %134 = vector.load %arg3[%c2_119, %c2_120, %c0_121, %c0_122] : memref<3x3x1x4xf32, #tpu.memory_space<vmem>>, vector<1x1x1x4xf32>
    %135 = vector.shape_cast %134 : vector<1x1x1x4xf32> to vector<1x4xf32>
    %136 = vector.extract_strided_slice %92 {offsets = [0, 76], sizes = [4, 210], strides = [1, 1]} : vector<4x324xf32> to vector<4x210xf32>
    %cst_123 = arith.constant dense<0.000000e+00> : vector<1x210xf32>
    %137 = tpu.matmul %135, %136, %cst_123 {dimension_numbers = #tpu.dot_dimension_numbers<[1], [0], [0], [1], [0, 0, 1, 1], [], []>} : vector<1x4xf32>, vector<4x210xf32>, vector<1x210xf32> -> vector<1x210xf32>
    %138 = arith.addf %133, %137 : vector<1x210xf32>
    %cst_124 = arith.constant 0.000000e+00 : f32
    %139 = vector.broadcast %cst_124 : f32 to vector<1x210xf32>
    %140 = arith.maximumf %138, %139 : vector<1x210xf32>
    %141 = arith.mulf %140, %38 : vector<1x210xf32>
    %cst_125 = arith.constant 0.000000e+00 : f32
    %142 = vector.broadcast %cst_125 : f32 to vector<1x324xf32>
    %c0_126 = arith.constant 0 : index
    %c0_127 = arith.constant 0 : index
    %143 = vector.load %arg13[%c0_126, %c0_127] : memref<1x324xf32, #tpu.memory_space<vmem>>, vector<1x324xf32>
    tpu.vector_store %arg13[%c0_126, %c0_127], %142 {strides = array<i32>} : memref<1x324xf32, #tpu.memory_space<vmem>>, vector<1x324xf32>,
    %c0_128 = arith.constant 0 : index
    %c38_129 = arith.constant 38 : index
    %144 = vector.load %arg13[%c0_128, %c38_129] : memref<1x324xf32, #tpu.memory_space<vmem>>, vector<1x210xf32>
    tpu.vector_store %arg13[%c0_128, %c38_129], %141 {strides = array<i32>} : memref<1x324xf32, #tpu.memory_space<vmem>>, vector<1x210xf32>,
    %c0_130 = arith.constant 0 : index
    %c0_131 = arith.constant 0 : index
    %145 = vector.load %arg13[%c0_130, %c0_131] : memref<1x324xf32, #tpu.memory_space<vmem>>, vector<1x324xf32>
    %cst_132 = arith.constant 0.000000e+00 : f32
    %146 = vector.broadcast %cst_132 : f32 to vector<4x248xf32>
    %c0_133 = arith.constant 0 : index
    %c0_134 = arith.constant 0 : index
    %c0_135 = arith.constant 0 : index
    %c0_136 = arith.constant 0 : index
    %147 = vector.load %arg4[%c0_133, %c0_134, %c0_135, %c0_136] : memref<3x3x4x1xf32, #tpu.memory_space<vmem>>, vector<1x1x4x1xf32>
    %148 = vector.shape_cast %147 : vector<1x1x4x1xf32> to vector<4x1xf32>
    %149 = vector.extract_strided_slice %145 {offsets = [0, 0], sizes = [1, 248], strides = [1, 1]} : vector<1x324xf32> to vector<1x248xf32>
    %cst_137 = arith.constant dense<0.000000e+00> : vector<4x248xf32>
    %150 = tpu.matmul %148, %149, %cst_137 {dimension_numbers = #tpu.dot_dimension_numbers<[1], [0], [0], [1], [0, 0, 1, 1], [], []>} : vector<4x1xf32>, vector<1x248xf32>, vector<4x248xf32> -> vector<4x248xf32>
    %151 = arith.addf %146, %150 : vector<4x248xf32>
    %c0_138 = arith.constant 0 : index
    %c1_139 = arith.constant 1 : index
    %c0_140 = arith.constant 0 : index
    %c0_141 = arith.constant 0 : index
    %152 = vector.load %arg4[%c0_138, %c1_139, %c0_140, %c0_141] : memref<3x3x4x1xf32, #tpu.memory_space<vmem>>, vector<1x1x4x1xf32>
    %153 = vector.shape_cast %152 : vector<1x1x4x1xf32> to vector<4x1xf32>
    %154 = vector.extract_strided_slice %145 {offsets = [0, 1], sizes = [1, 248], strides = [1, 1]} : vector<1x324xf32> to vector<1x248xf32>
    %cst_142 = arith.constant dense<0.000000e+00> : vector<4x248xf32>
    %155 = tpu.matmul %153, %154, %cst_142 {dimension_numbers = #tpu.dot_dimension_numbers<[1], [0], [0], [1], [0, 0, 1, 1], [], []>} : vector<4x1xf32>, vector<1x248xf32>, vector<4x248xf32> -> vector<4x248xf32>
    %156 = arith.addf %151, %155 : vector<4x248xf32>
    %c0_143 = arith.constant 0 : index
    %c2_144 = arith.constant 2 : index
    %c0_145 = arith.constant 0 : index
    %c0_146 = arith.constant 0 : index
    %157 = vector.load %arg4[%c0_143, %c2_144, %c0_145, %c0_146] : memref<3x3x4x1xf32, #tpu.memory_space<vmem>>, vector<1x1x4x1xf32>
    %158 = vector.shape_cast %157 : vector<1x1x4x1xf32> to vector<4x1xf32>
    %159 = vector.extract_strided_slice %145 {offsets = [0, 2], sizes = [1, 248], strides = [1, 1]} : vector<1x324xf32> to vector<1x248xf32>
    %cst_147 = arith.constant dense<0.000000e+00> : vector<4x248xf32>
    %160 = tpu.matmul %158, %159, %cst_147 {dimension_numbers = #tpu.dot_dimension_numbers<[1], [0], [0], [1], [0, 0, 1, 1], [], []>} : vector<4x1xf32>, vector<1x248xf32>, vector<4x248xf32> -> vector<4x248xf32>
    %161 = arith.addf %156, %160 : vector<4x248xf32>
    %c1_148 = arith.constant 1 : index
    %c0_149 = arith.constant 0 : index
    %c0_150 = arith.constant 0 : index
    %c0_151 = arith.constant 0 : index
    %162 = vector.load %arg4[%c1_148, %c0_149, %c0_150, %c0_151] : memref<3x3x4x1xf32, #tpu.memory_space<vmem>>, vector<1x1x4x1xf32>
    %163 = vector.shape_cast %162 : vector<1x1x4x1xf32> to vector<4x1xf32>
    %164 = vector.extract_strided_slice %145 {offsets = [0, 18], sizes = [1, 248], strides = [1, 1]} : vector<1x324xf32> to vector<1x248xf32>
    %cst_152 = arith.constant dense<0.000000e+00> : vector<4x248xf32>
    %165 = tpu.matmul %163, %164, %cst_152 {dimension_numbers = #tpu.dot_dimension_numbers<[1], [0], [0], [1], [0, 0, 1, 1], [], []>} : vector<4x1xf32>, vector<1x248xf32>, vector<4x248xf32> -> vector<4x248xf32>
    %166 = arith.addf %161, %165 : vector<4x248xf32>
    %c1_153 = arith.constant 1 : index
    %c1_154 = arith.constant 1 : index
    %c0_155 = arith.constant 0 : index
    %c0_156 = arith.constant 0 : index
    %167 = vector.load %arg4[%c1_153, %c1_154, %c0_155, %c0_156] : memref<3x3x4x1xf32, #tpu.memory_space<vmem>>, vector<1x1x4x1xf32>
    %168 = vector.shape_cast %167 : vector<1x1x4x1xf32> to vector<4x1xf32>
    %169 = vector.extract_strided_slice %145 {offsets = [0, 19], sizes = [1, 248], strides = [1, 1]} : vector<1x324xf32> to vector<1x248xf32>
    %cst_157 = arith.constant dense<0.000000e+00> : vector<4x248xf32>
    %170 = tpu.matmul %168, %169, %cst_157 {dimension_numbers = #tpu.dot_dimension_numbers<[1], [0], [0], [1], [0, 0, 1, 1], [], []>} : vector<4x1xf32>, vector<1x248xf32>, vector<4x248xf32> -> vector<4x248xf32>
    %171 = arith.addf %166, %170 : vector<4x248xf32>
    %c1_158 = arith.constant 1 : index
    %c2_159 = arith.constant 2 : index
    %c0_160 = arith.constant 0 : index
    %c0_161 = arith.constant 0 : index
    %172 = vector.load %arg4[%c1_158, %c2_159, %c0_160, %c0_161] : memref<3x3x4x1xf32, #tpu.memory_space<vmem>>, vector<1x1x4x1xf32>
    %173 = vector.shape_cast %172 : vector<1x1x4x1xf32> to vector<4x1xf32>
    %174 = vector.extract_strided_slice %145 {offsets = [0, 20], sizes = [1, 248], strides = [1, 1]} : vector<1x324xf32> to vector<1x248xf32>
    %cst_162 = arith.constant dense<0.000000e+00> : vector<4x248xf32>
    %175 = tpu.matmul %173, %174, %cst_162 {dimension_numbers = #tpu.dot_dimension_numbers<[1], [0], [0], [1], [0, 0, 1, 1], [], []>} : vector<4x1xf32>, vector<1x248xf32>, vector<4x248xf32> -> vector<4x248xf32>
    %176 = arith.addf %171, %175 : vector<4x248xf32>
    %c2_163 = arith.constant 2 : index
    %c0_164 = arith.constant 0 : index
    %c0_165 = arith.constant 0 : index
    %c0_166 = arith.constant 0 : index
    %177 = vector.load %arg4[%c2_163, %c0_164, %c0_165, %c0_166] : memref<3x3x4x1xf32, #tpu.memory_space<vmem>>, vector<1x1x4x1xf32>
    %178 = vector.shape_cast %177 : vector<1x1x4x1xf32> to vector<4x1xf32>
    %179 = vector.extract_strided_slice %145 {offsets = [0, 36], sizes = [1, 248], strides = [1, 1]} : vector<1x324xf32> to vector<1x248xf32>
    %cst_167 = arith.constant dense<0.000000e+00> : vector<4x248xf32>
    %180 = tpu.matmul %178, %179, %cst_167 {dimension_numbers = #tpu.dot_dimension_numbers<[1], [0], [0], [1], [0, 0, 1, 1], [], []>} : vector<4x1xf32>, vector<1x248xf32>, vector<4x248xf32> -> vector<4x248xf32>
    %181 = arith.addf %176, %180 : vector<4x248xf32>
    %c2_168 = arith.constant 2 : index
    %c1_169 = arith.constant 1 : index
    %c0_170 = arith.constant 0 : index
    %c0_171 = arith.constant 0 : index
    %182 = vector.load %arg4[%c2_168, %c1_169, %c0_170, %c0_171] : memref<3x3x4x1xf32, #tpu.memory_space<vmem>>, vector<1x1x4x1xf32>
    %183 = vector.shape_cast %182 : vector<1x1x4x1xf32> to vector<4x1xf32>
    %184 = vector.extract_strided_slice %145 {offsets = [0, 37], sizes = [1, 248], strides = [1, 1]} : vector<1x324xf32> to vector<1x248xf32>
    %cst_172 = arith.constant dense<0.000000e+00> : vector<4x248xf32>
    %185 = tpu.matmul %183, %184, %cst_172 {dimension_numbers = #tpu.dot_dimension_numbers<[1], [0], [0], [1], [0, 0, 1, 1], [], []>} : vector<4x1xf32>, vector<1x248xf32>, vector<4x248xf32> -> vector<4x248xf32>
    %186 = arith.addf %181, %185 : vector<4x248xf32>
    %c2_173 = arith.constant 2 : index
    %c2_174 = arith.constant 2 : index
    %c0_175 = arith.constant 0 : index
    %c0_176 = arith.constant 0 : index
    %187 = vector.load %arg4[%c2_173, %c2_174, %c0_175, %c0_176] : memref<3x3x4x1xf32, #tpu.memory_space<vmem>>, vector<1x1x4x1xf32>
    %188 = vector.shape_cast %187 : vector<1x1x4x1xf32> to vector<4x1xf32>
    %189 = vector.extract_strided_slice %145 {offsets = [0, 38], sizes = [1, 248], strides = [1, 1]} : vector<1x324xf32> to vector<1x248xf32>
    %cst_177 = arith.constant dense<0.000000e+00> : vector<4x248xf32>
    %190 = tpu.matmul %188, %189, %cst_177 {dimension_numbers = #tpu.dot_dimension_numbers<[1], [0], [0], [1], [0, 0, 1, 1], [], []>} : vector<4x1xf32>, vector<1x248xf32>, vector<4x248xf32> -> vector<4x248xf32>
    %191 = arith.addf %186, %190 : vector<4x248xf32>
    %cst_178 = arith.constant 0.000000e+00 : f32
    %192 = vector.broadcast %cst_178 : f32 to vector<4x248xf32>
    %193 = arith.maximumf %191, %192 : vector<4x248xf32>
    %194 = vector.broadcast %37 : vector<1x248xf32> to vector<4x248xf32>
    %195 = arith.mulf %193, %194 : vector<4x248xf32>
    %cst_179 = arith.constant 0.000000e+00 : f32
    %196 = vector.broadcast %cst_179 : f32 to vector<4x324xf32>
    %c0_180 = arith.constant 0 : index
    %c0_181 = arith.constant 0 : index
    %197 = vector.load %arg14[%c0_180, %c0_181] : memref<4x324xf32, #tpu.memory_space<vmem>>, vector<4x324xf32>
    tpu.vector_store %arg14[%c0_180, %c0_181], %196 {strides = array<i32>} : memref<4x324xf32, #tpu.memory_space<vmem>>, vector<4x324xf32>,
    %c0_182 = arith.constant 0 : index
    %c38_183 = arith.constant 38 : index
    %198 = vector.load %arg14[%c0_182, %c38_183] : memref<4x324xf32, #tpu.memory_space<vmem>>, vector<4x248xf32>
    tpu.vector_store %arg14[%c0_182, %c38_183], %195 {strides = array<i32>} : memref<4x324xf32, #tpu.memory_space<vmem>>, vector<4x248xf32>,
    %c0_184 = arith.constant 0 : index
    %c0_185 = arith.constant 0 : index
    %199 = vector.load %arg14[%c0_184, %c0_185] : memref<4x324xf32, #tpu.memory_space<vmem>>, vector<4x324xf32>
    %cst_186 = arith.constant 0.000000e+00 : f32
    %200 = vector.broadcast %cst_186 : f32 to vector<16x286xf32>
    %c0_187 = arith.constant 0 : index
    %c0_188 = arith.constant 0 : index
    %c0_189 = arith.constant 0 : index
    %c0_190 = arith.constant 0 : index
    %201 = vector.load %arg5[%c0_187, %c0_188, %c0_189, %c0_190] : memref<3x3x16x4xf32, #tpu.memory_space<vmem>>, vector<1x1x16x4xf32>
    %202 = vector.shape_cast %201 : vector<1x1x16x4xf32> to vector<16x4xf32>
    %203 = vector.extract_strided_slice %199 {offsets = [0, 0], sizes = [4, 286], strides = [1, 1]} : vector<4x324xf32> to vector<4x286xf32>
    %cst_191 = arith.constant dense<0.000000e+00> : vector<16x286xf32>
    %204 = tpu.matmul %202, %203, %cst_191 {dimension_numbers = #tpu.dot_dimension_numbers<[1], [0], [0], [1], [0, 0, 1, 1], [], []>} : vector<16x4xf32>, vector<4x286xf32>, vector<16x286xf32> -> vector<16x286xf32>
    %205 = arith.addf %200, %204 : vector<16x286xf32>
    %c0_192 = arith.constant 0 : index
    %c1_193 = arith.constant 1 : index
    %c0_194 = arith.constant 0 : index
    %c0_195 = arith.constant 0 : index
    %206 = vector.load %arg5[%c0_192, %c1_193, %c0_194, %c0_195] : memref<3x3x16x4xf32, #tpu.memory_space<vmem>>, vector<1x1x16x4xf32>
    %207 = vector.shape_cast %206 : vector<1x1x16x4xf32> to vector<16x4xf32>
    %208 = vector.extract_strided_slice %199 {offsets = [0, 1], sizes = [4, 286], strides = [1, 1]} : vector<4x324xf32> to vector<4x286xf32>
    %cst_196 = arith.constant dense<0.000000e+00> : vector<16x286xf32>
    %209 = tpu.matmul %207, %208, %cst_196 {dimension_numbers = #tpu.dot_dimension_numbers<[1], [0], [0], [1], [0, 0, 1, 1], [], []>} : vector<16x4xf32>, vector<4x286xf32>, vector<16x286xf32> -> vector<16x286xf32>
    %210 = arith.addf %205, %209 : vector<16x286xf32>
    %c0_197 = arith.constant 0 : index
    %c2_198 = arith.constant 2 : index
    %c0_199 = arith.constant 0 : index
    %c0_200 = arith.constant 0 : index
    %211 = vector.load %arg5[%c0_197, %c2_198, %c0_199, %c0_200] : memref<3x3x16x4xf32, #tpu.memory_space<vmem>>, vector<1x1x16x4xf32>
    %212 = vector.shape_cast %211 : vector<1x1x16x4xf32> to vector<16x4xf32>
    %213 = vector.extract_strided_slice %199 {offsets = [0, 2], sizes = [4, 286], strides = [1, 1]} : vector<4x324xf32> to vector<4x286xf32>
    %cst_201 = arith.constant dense<0.000000e+00> : vector<16x286xf32>
    %214 = tpu.matmul %212, %213, %cst_201 {dimension_numbers = #tpu.dot_dimension_numbers<[1], [0], [0], [1], [0, 0, 1, 1], [], []>} : vector<16x4xf32>, vector<4x286xf32>, vector<16x286xf32> -> vector<16x286xf32>
    %215 = arith.addf %210, %214 : vector<16x286xf32>
    %c1_202 = arith.constant 1 : index
    %c0_203 = arith.constant 0 : index
    %c0_204 = arith.constant 0 : index
    %c0_205 = arith.constant 0 : index
    %216 = vector.load %arg5[%c1_202, %c0_203, %c0_204, %c0_205] : memref<3x3x16x4xf32, #tpu.memory_space<vmem>>, vector<1x1x16x4xf32>
    %217 = vector.shape_cast %216 : vector<1x1x16x4xf32> to vector<16x4xf32>
    %218 = vector.extract_strided_slice %199 {offsets = [0, 18], sizes = [4, 286], strides = [1, 1]} : vector<4x324xf32> to vector<4x286xf32>
    %cst_206 = arith.constant dense<0.000000e+00> : vector<16x286xf32>
    %219 = tpu.matmul %217, %218, %cst_206 {dimension_numbers = #tpu.dot_dimension_numbers<[1], [0], [0], [1], [0, 0, 1, 1], [], []>} : vector<16x4xf32>, vector<4x286xf32>, vector<16x286xf32> -> vector<16x286xf32>
    %220 = arith.addf %215, %219 : vector<16x286xf32>
    %c1_207 = arith.constant 1 : index
    %c1_208 = arith.constant 1 : index
    %c0_209 = arith.constant 0 : index
    %c0_210 = arith.constant 0 : index
    %221 = vector.load %arg5[%c1_207, %c1_208, %c0_209, %c0_210] : memref<3x3x16x4xf32, #tpu.memory_space<vmem>>, vector<1x1x16x4xf32>
    %222 = vector.shape_cast %221 : vector<1x1x16x4xf32> to vector<16x4xf32>
    %223 = vector.extract_strided_slice %199 {offsets = [0, 19], sizes = [4, 286], strides = [1, 1]} : vector<4x324xf32> to vector<4x286xf32>
    %cst_211 = arith.constant dense<0.000000e+00> : vector<16x286xf32>
    %224 = tpu.matmul %222, %223, %cst_211 {dimension_numbers = #tpu.dot_dimension_numbers<[1], [0], [0], [1], [0, 0, 1, 1], [], []>} : vector<16x4xf32>, vector<4x286xf32>, vector<16x286xf32> -> vector<16x286xf32>
    %225 = arith.addf %220, %224 : vector<16x286xf32>
    %c1_212 = arith.constant 1 : index
    %c2_213 = arith.constant 2 : index
    %c0_214 = arith.constant 0 : index
    %c0_215 = arith.constant 0 : index
    %226 = vector.load %arg5[%c1_212, %c2_213, %c0_214, %c0_215] : memref<3x3x16x4xf32, #tpu.memory_space<vmem>>, vector<1x1x16x4xf32>
    %227 = vector.shape_cast %226 : vector<1x1x16x4xf32> to vector<16x4xf32>
    %228 = vector.extract_strided_slice %199 {offsets = [0, 20], sizes = [4, 286], strides = [1, 1]} : vector<4x324xf32> to vector<4x286xf32>
    %cst_216 = arith.constant dense<0.000000e+00> : vector<16x286xf32>
    %229 = tpu.matmul %227, %228, %cst_216 {dimension_numbers = #tpu.dot_dimension_numbers<[1], [0], [0], [1], [0, 0, 1, 1], [], []>} : vector<16x4xf32>, vector<4x286xf32>, vector<16x286xf32> -> vector<16x286xf32>
    %230 = arith.addf %225, %229 : vector<16x286xf32>
    %c2_217 = arith.constant 2 : index
    %c0_218 = arith.constant 0 : index
    %c0_219 = arith.constant 0 : index
    %c0_220 = arith.constant 0 : index
    %231 = vector.load %arg5[%c2_217, %c0_218, %c0_219, %c0_220] : memref<3x3x16x4xf32, #tpu.memory_space<vmem>>, vector<1x1x16x4xf32>
    %232 = vector.shape_cast %231 : vector<1x1x16x4xf32> to vector<16x4xf32>
    %233 = vector.extract_strided_slice %199 {offsets = [0, 36], sizes = [4, 286], strides = [1, 1]} : vector<4x324xf32> to vector<4x286xf32>
    %cst_221 = arith.constant dense<0.000000e+00> : vector<16x286xf32>
    %234 = tpu.matmul %232, %233, %cst_221 {dimension_numbers = #tpu.dot_dimension_numbers<[1], [0], [0], [1], [0, 0, 1, 1], [], []>} : vector<16x4xf32>, vector<4x286xf32>, vector<16x286xf32> -> vector<16x286xf32>
    %235 = arith.addf %230, %234 : vector<16x286xf32>
    %c2_222 = arith.constant 2 : index
    %c1_223 = arith.constant 1 : index
    %c0_224 = arith.constant 0 : index
    %c0_225 = arith.constant 0 : index
    %236 = vector.load %arg5[%c2_222, %c1_223, %c0_224, %c0_225] : memref<3x3x16x4xf32, #tpu.memory_space<vmem>>, vector<1x1x16x4xf32>
    %237 = vector.shape_cast %236 : vector<1x1x16x4xf32> to vector<16x4xf32>
    %238 = vector.extract_strided_slice %199 {offsets = [0, 37], sizes = [4, 286], strides = [1, 1]} : vector<4x324xf32> to vector<4x286xf32>
    %cst_226 = arith.constant dense<0.000000e+00> : vector<16x286xf32>
    %239 = tpu.matmul %237, %238, %cst_226 {dimension_numbers = #tpu.dot_dimension_numbers<[1], [0], [0], [1], [0, 0, 1, 1], [], []>} : vector<16x4xf32>, vector<4x286xf32>, vector<16x286xf32> -> vector<16x286xf32>
    %240 = arith.addf %235, %239 : vector<16x286xf32>
    %c2_227 = arith.constant 2 : index
    %c2_228 = arith.constant 2 : index
    %c0_229 = arith.constant 0 : index
    %c0_230 = arith.constant 0 : index
    %241 = vector.load %arg5[%c2_227, %c2_228, %c0_229, %c0_230] : memref<3x3x16x4xf32, #tpu.memory_space<vmem>>, vector<1x1x16x4xf32>
    %242 = vector.shape_cast %241 : vector<1x1x16x4xf32> to vector<16x4xf32>
    %243 = vector.extract_strided_slice %199 {offsets = [0, 38], sizes = [4, 286], strides = [1, 1]} : vector<4x324xf32> to vector<4x286xf32>
    %cst_231 = arith.constant dense<0.000000e+00> : vector<16x286xf32>
    %244 = tpu.matmul %242, %243, %cst_231 {dimension_numbers = #tpu.dot_dimension_numbers<[1], [0], [0], [1], [0, 0, 1, 1], [], []>} : vector<16x4xf32>, vector<4x286xf32>, vector<16x286xf32> -> vector<16x286xf32>
    %245 = arith.addf %240, %244 : vector<16x286xf32>
    %cst_232 = arith.constant 0.000000e+00 : f32
    %246 = vector.broadcast %cst_232 : f32 to vector<16x286xf32>
    %247 = arith.maximumf %245, %246 : vector<16x286xf32>
    %cst_233 = arith.constant 0.000000e+00 : f32
    %248 = vector.broadcast %cst_233 : f32 to vector<16x324xf32>
    %c0_234 = arith.constant 0 : index
    %c0_235 = arith.constant 0 : index
    %249 = vector.load %arg15[%c0_234, %c0_235] : memref<16x324xf32, #tpu.memory_space<vmem>>, vector<16x324xf32>
    tpu.vector_store %arg15[%c0_234, %c0_235], %248 {strides = array<i32>} : memref<16x324xf32, #tpu.memory_space<vmem>>, vector<16x324xf32>,
    %c0_236 = arith.constant 0 : index
    %c38_237 = arith.constant 38 : index
    %250 = vector.load %arg15[%c0_236, %c38_237] : memref<16x324xf32, #tpu.memory_space<vmem>>, vector<16x286xf32>
    tpu.vector_store %arg15[%c0_236, %c38_237], %247 {strides = array<i32>} : memref<16x324xf32, #tpu.memory_space<vmem>>, vector<16x286xf32>,
    %c0_238 = arith.constant 0 : index
    %c0_239 = arith.constant 0 : index
    %251 = vector.load %arg6[%c0_238, %c0_239] : memref<16x16xf32, #tpu.memory_space<vmem>>, vector<16x16xf32>
    %c0_240 = arith.constant 0 : index
    %c0_241 = arith.constant 0 : index
    %252 = vector.load %arg15[%c0_240, %c0_241] : memref<16x324xf32, #tpu.memory_space<vmem>>, vector<16x324xf32>
    %cst_242 = arith.constant dense<0.000000e+00> : vector<16x324xf32>
    %253 = tpu.matmul %251, %252, %cst_242 {dimension_numbers = #tpu.dot_dimension_numbers<[1], [0], [0], [1], [0, 0, 1, 1], [], []>} : vector<16x16xf32>, vector<16x324xf32>, vector<16x324xf32> -> vector<16x324xf32>
    %c0_243 = arith.constant 0 : index
    %c0_244 = arith.constant 0 : index
    %254 = vector.load %arg7[%c0_243, %c0_244] : memref<16x16xf32, #tpu.memory_space<vmem>>, vector<16x16xf32>
    %cst_245 = arith.constant dense<0.000000e+00> : vector<16x324xf32>
    %255 = tpu.matmul %254, %36, %cst_245 {dimension_numbers = #tpu.dot_dimension_numbers<[1], [0], [0], [1], [0, 0, 1, 1], [], []>} : vector<16x16xf32>, vector<16x324xf32>, vector<16x324xf32> -> vector<16x324xf32>
    %256 = arith.addf %253, %255 : vector<16x324xf32>
    %c0_246 = arith.constant 0 : index
    %c0_247 = arith.constant 0 : index
    %c0_248 = arith.constant 0 : index
    %257 = vector.load %arg10[%c0_246, %c0_247, %c0_248] : memref<1x16x324xf32, #tpu.memory_space<vmem>>, vector<1x16x324xf32>
    %258 = vector.shape_cast %257 : vector<1x16x324xf32> to vector<16x324xf32>
    %259 = vector.shape_cast %256 : vector<16x324xf32> to vector<1x16x324xf32>
    tpu.vector_store %arg10[%c0_246, %c0_247, %c0_248], %259 {strides = array<i32>} : memref<1x16x324xf32, #tpu.memory_space<vmem>>, vector<1x16x324xf32>,
    return
  }
  func.func @transform_0(%arg0: i32) -> (i32, i32, i32) {
    %c0_i32 = arith.constant 0 : i32
    %c0_i32_0 = arith.constant 0 : i32
    %c0_i32_1 = arith.constant 0 : i32
    return %arg0, %c0_i32, %c0_i32_0 : i32, i32, i32
  }
  func.func @transform_1(%arg0: i32) -> (i32, i32, i32, i32) {
    %c0_i32 = arith.constant 0 : i32
    %c0_i32_0 = arith.constant 0 : i32
    %c0_i32_1 = arith.constant 0 : i32
    %c0_i32_2 = arith.constant 0 : i32
    %c0_i32_3 = arith.constant 0 : i32
    return %c0_i32, %c0_i32_0, %c0_i32_1, %c0_i32_2 : i32, i32, i32, i32
  }
  func.func @transform_2(%arg0: i32) -> (i32, i32, i32, i32) {
    %c0_i32 = arith.constant 0 : i32
    %c0_i32_0 = arith.constant 0 : i32
    %c0_i32_1 = arith.constant 0 : i32
    %c0_i32_2 = arith.constant 0 : i32
    %c0_i32_3 = arith.constant 0 : i32
    return %c0_i32, %c0_i32_0, %c0_i32_1, %c0_i32_2 : i32, i32, i32, i32
  }
  func.func @transform_3(%arg0: i32) -> (i32, i32, i32, i32) {
    %c0_i32 = arith.constant 0 : i32
    %c0_i32_0 = arith.constant 0 : i32
    %c0_i32_1 = arith.constant 0 : i32
    %c0_i32_2 = arith.constant 0 : i32
    %c0_i32_3 = arith.constant 0 : i32
    return %c0_i32, %c0_i32_0, %c0_i32_1, %c0_i32_2 : i32, i32, i32, i32
  }
  func.func @transform_4(%arg0: i32) -> (i32, i32, i32, i32) {
    %c0_i32 = arith.constant 0 : i32
    %c0_i32_0 = arith.constant 0 : i32
    %c0_i32_1 = arith.constant 0 : i32
    %c0_i32_2 = arith.constant 0 : i32
    %c0_i32_3 = arith.constant 0 : i32
    return %c0_i32, %c0_i32_0, %c0_i32_1, %c0_i32_2 : i32, i32, i32, i32
  }
  func.func @transform_5(%arg0: i32) -> (i32, i32) {
    %c0_i32 = arith.constant 0 : i32
    %c0_i32_0 = arith.constant 0 : i32
    %c0_i32_1 = arith.constant 0 : i32
    return %c0_i32, %c0_i32_0 : i32, i32
  }
  func.func @transform_6(%arg0: i32) -> (i32, i32) {
    %c0_i32 = arith.constant 0 : i32
    %c0_i32_0 = arith.constant 0 : i32
    %c0_i32_1 = arith.constant 0 : i32
    return %c0_i32, %c0_i32_0 : i32, i32
  }
  func.func @transform_7(%arg0: i32) -> (i32, i32) {
    %c0_i32 = arith.constant 0 : i32
    %c0_i32_0 = arith.constant 0 : i32
    %c0_i32_1 = arith.constant 0 : i32
    return %c0_i32, %c0_i32_0 : i32, i32
  }
  func.func @transform_8(%arg0: i32) -> (i32, i32) {
    %c0_i32 = arith.constant 0 : i32
    %c0_i32_0 = arith.constant 0 : i32
    %c0_i32_1 = arith.constant 0 : i32
    return %c0_i32, %c0_i32_0 : i32, i32
  }
  func.func @transform_9(%arg0: i32) -> (i32, i32, i32) {
    %c0_i32 = arith.constant 0 : i32
    %c0_i32_0 = arith.constant 0 : i32
    %c0_i32_1 = arith.constant 0 : i32
    return %arg0, %c0_i32, %c0_i32_0 : i32, i32, i32
  }
}

</mosaic_0001>

<bundles_post_ra>
// kernel: autoencoder_forward.1
= control target key start
LH: loop header
LB: loop body
LE: loop exit
PB: predicated region body
PF: predicated region fallthrough
CT: control target
= control target key end

     0   :  { %s5858_s30 = smov 0   ;;  %s6603_s0 = inlined_call_operand.vmem [shape: f32[2,16,256], index: 0, kind: input, shape index: {}]   ;;  %s6604_s1 = inlined_call_operand.vmem [shape: f32[3,3,4,16], index: 1, kind: input, shape index: {}]   ;;  %s6605_s2 = inlined_call_operand.vmem [shape: f32[3,3,1,4], index: 2, kind: input, shape index: {}]   ;;  %s6606_s3 = inlined_call_operand.vmem [shape: f32[3,3,4,1], index: 3, kind: input, shape index: {}]   ;;  %s6607_s4 = inlined_call_operand.vmem [shape: f32[3,3,16,4], index: 4, kind: input, shape index: {}]   ;;  %s6608_s5 = inlined_call_operand.vmem [shape: f32[16,16], index: 5, kind: input, shape index: {}]   ;;  %s6609_s6 = inlined_call_operand.vmem [shape: f32[16,16], index: 6, kind: input, shape index: {}]   ;;  %s6610_s7 = inlined_call_operand.vmem [shape: f32[1,324], index: 7, kind: input, shape index: {}]   ;;  %s6611_s8 = inlined_call_operand.vmem [shape: f32[1,324], index: 8, kind: input, shape index: {}]   ;;  %s6612_s9 = inlined_call_operand.vmem [shape: f32[2,16,324], index: 9, kind: output, shape index: {}]  }
   0x1 LB: > { %s5156_s10 = sadd.s32 4294967295, %s5774_s30   ;;  %p5160_p0 = scmp.ge.s32.totalorder %s5774_s30, 1  ;;  %s5774_s30 = sphi %s5858_s30, %s19_s30  }
   0x2   : > { %p287_p1 = scmp.lt.s32.totalorder %s5774_s30, 3 }
   0x4   : > { %p288_p2 = pnand %p5160_p0, %p287_p1 }
   0x5   : > { %p323_p3 = scmp.lt.s32.totalorder (!%p288_p2), %s5156_s10, 1  ;;  %v5776_v0 = vmov (!%p288_p2), 0.0   ;;  %s5777_s15 = smov (!%p288_p2), 50   ;;  %vm6613_vm0 = vcmask (!%p288_p2), 556032   ;;  %vm397_vm1 = vcmask (!%p288_p2), 130048   ;;  %vm406_vm2 = vcmask (!%p288_p2), 277648  }
   0x6   : > { %291 = sbr.rel (%p288_p2) target bundleno = 2561 (0xa01), region = 56  ;;  %334 = vst [vmem:[#allocation2 + $0x8] sm:$0xff] (!%p288_p2), %v5776_v0  ;;  %333 = vst [vmem:[#allocation2] sm:$0xff] (!%p288_p2), %v5776_v0  ;;  %600 = vmatprep.mubr.f32.mxu0 (!%p288_p2), %v5776_v0  ;;  %1514 = vmatprep.mubr.f32.mxu1 (!%p288_p2), %v5776_v0  ;;  %s5778_s16 = smov (!%p288_p2), 48   ;;  %vm415_vm3 = vcmask (!%p288_p2), 425248   ;;  %vm426_vm4 = vcmask (!%p288_p2), 572848  }
   0x7   : > { %337 = vst [vmem:[#allocation2 + $0x18] sm:$0xff] (!%p288_p2), %v5776_v0  ;;  %338 = vst [vmem:[#allocation2 + $0x20] sm:$0xff] (!%p288_p2), %v5776_v0  ;;  %s5779_s17 = smov (!%p288_p2), 52   ;;  %s5780_s18 = smov (!%p288_p2), 54   ;;  %vm352_vm5 = vcmask (!%p288_p2), 441648   ;;  %vm435_vm6 = vcmask (!%p288_p2), 720448  }
   0x8   : > { %1410 = vst [vmem:[#allocation3] sm:$0xff] (!%p288_p2), %v5776_v0  ;;  %3096 = vst [vmem:[#allocation5] sm:$0xff] (!%p288_p2), %v5776_v0  ;;  %s5781_s19 = smov (!%p288_p2), 38   ;;  %s5782_s20 = smov (!%p288_p2), 56   ;;  %vm464_vm7 = vcmask (!%p288_p2), 113664   ;;  %vm361_vm8 = vcmask (!%p288_p2), 589248  }
   0x9   : > { %4728 = vst [vmem:[#allocation6] sm:$0xff] (!%p288_p2), %v5776_v0  ;;  %4731 = vst [vmem:[#allocation6 + $0x18] sm:$0xff] (!%p288_p2), %v5776_v0  ;;  %s5783_s21 = smov (!%p288_p2), 62   ;;  %s5784_s22 = smov (!%p288_p2), 40   ;;  %vm444_vm9 = vcmask (!%p288_p2), 868048   ;;  %vm474_vm10 = vcmask (!%p288_p2), 261248  }
   0xa   : > { %339 = vst.msk [vmem:[#allocation2 + $0x28] sm:$0xff] (!%p288_p2), %vm6613_vm0, %v5776_v0  ;;  %336 = vst.msk [vmem:[#allocation2 + $0x10] sm:$0xff] (!%p288_p2), %vm6613_vm0, %v5776_v0  ;;  %s5785_s23 = smov (!%p288_p2), 58   ;;  %s5786_s24 = smov (!%p288_p2), 64   ;;  %vm370_vm11 = vcmask (!%p288_p2), 736848   ;;  %vm453_vm12 = vcmask (!%p288_p2), 1015648  }
   0xb   : > { %4730 = vst.msk [vmem:[#allocation6 + $0x10] sm:$0xff] (!%p288_p2), %vm6613_vm0, %v5776_v0  ;;  %4733 = vst.msk [vmem:[#allocation6 + $0x28] sm:$0xff] (!%p288_p2), %vm6613_vm0, %v5776_v0  ;;  %s5787_s25 = smov (!%p288_p2), 42   ;;  %s5788_s26 = smov (!%p288_p2), 60   ;;  %vm462_vm13 = vcmask (!%p288_p2), 1048560   ;;  %vm483_vm14 = vcmask (!%p288_p2), 408848  }
   0xc   : > { %s5789_s27 = smov (!%p288_p2), 66   ;;  %s5790_s28 = smov (!%p288_p2), 44   ;;  %vm379_vm15 = vcmask (!%p288_p2), 884448   ;;  %vm2919_vm0 = vcmask (!%p288_p2), 744448  }
   0xd   : > { %s6621_s10 = smov (!%p323_p3, %s5156_s10), 1  ;;  %s5791_s29 = smov 68  }
   0xe   : > { %s5340_s11 = sshll.u32 %s6621_s10, 5  ;;  %s5793_s12 = smov 89  }
   0xf   : > { %s327_s14 = scalar_lea.vmem %s6603_s0, %s5340_s11  ;;  %s5792_s11 = smov 46  }
  0x10   : > { %v340_v1 = vld [vmem:[%s327_s14] sm:$0xff]  ;;  %v342_v2 = vld [vmem:[%s327_s14 + $0x10] sm:$0xff]  ;;  %v343_v3 = vld [vmem:[%s327_s14 + $0x18] sm:$0xff]  ;;  %s5794_s13 = smov 90  }
  0x11   : > { %400 = vrot.lane.b32.xlu1 %v340_v1, %s5777_s15  ;;  %391 = vrot.lane.b32.xlu0 %v340_v1, %s5778_s16  ;;  %v341_v4 = vld [vmem:[%s327_s14 + $0x8] sm:$0xff]  ;;  %s5795_s14 = smov 88  }
  0x15   : > { %402 = vrot.lane.b32.xlu1 %v342_v2, %s5777_s15  ;;  %393 = vrot.lane.b32.xlu0 %v342_v2, %s5778_s16  ;;  %s5796_s15 = smov 72   ;;  %s5797_s16 = smov 71  }
  0x19   : > { %411 = vrot.lane.b32.xlu1 %v342_v2, %s5779_s17  ;;  %409 = vrot.lane.b32.xlu0 %v340_v1, %s5779_s17 }
  0x1d   : > { %422 = vrot.lane.b32.xlu1 %v343_v3, %s5780_s18  ;;  %420 = vrot.lane.b32.xlu0 %v341_v4, %s5780_s18 }
  0x21   : > { %348 = vrot.lane.b32.xlu1 %v342_v2, %s5781_s19  ;;  %346 = vrot.lane.b32.xlu0 %v340_v1, %s5781_s19 }
  0x25   : > { %431 = vrot.lane.b32.xlu1 %v343_v3, %s5782_s20  ;;  %429 = vrot.lane.b32.xlu0 %v341_v4, %s5782_s20  ;;  %s5798_s20 = smov 70  }
  0x29   : > { %458 = vrot.lane.b32.xlu1 %v343_v3, %s5783_s21  ;;  %456 = vrot.lane.b32.xlu0 %v341_v4, %s5783_s21  ;;  %s5799_s21 = smov 53  }
  0x2d   : > { %357 = vrot.lane.b32.xlu1 %v342_v2, %s5784_s22  ;;  %355 = vrot.lane.b32.xlu0 %v340_v1, %s5784_s22 }
  0x31   : > { %440 = vrot.lane.b32.xlu1 %v343_v3, %s5785_s23  ;;  %438 = vrot.lane.b32.xlu0 %v341_v4, %s5785_s23 }
  0x35   : > { %470 = vrot.lane.b32.xlu1 %v343_v3, %s5786_s24  ;;  %468 = vrot.lane.b32.xlu0 %v341_v4, %s5786_s24  ;;  %s5806_s24 = smov 92  }
  0x39   : > { %366 = vrot.lane.b32.xlu1 %v342_v2, %s5787_s25  ;;  %364 = vrot.lane.b32.xlu0 %v340_v1, %s5787_s25  ;;  %s5807_s25 = smov 91  }
  0x3d   : > { %449 = vrot.lane.b32.xlu1 %v343_v3, %s5788_s26  ;;  %447 = vrot.lane.b32.xlu0 %v341_v4, %s5788_s26 }
  0x41   : > { %479 = vrot.lane.b32.xlu1 %v343_v3, %s5789_s27  ;;  %477 = vrot.lane.b32.xlu0 %v341_v4, %s5789_s27 }
  0x45   : > { %375 = vrot.lane.b32.xlu1 %v342_v2, %s5790_s28  ;;  %373 = vrot.lane.b32.xlu0 %v340_v1, %s5790_s28 }
  0x49   : > { %488 = vrot.lane.b32.xlu1 %v343_v3, %s5791_s29  ;;  %486 = vrot.lane.b32.xlu0 %v341_v4, %s5791_s29 }
  0x4d   : > { %384 = vrot.lane.b32.xlu1 %v342_v2, %s5792_s11  ;;  %382 = vrot.lane.b32.xlu0 %v340_v1, %s5792_s11 }
  0x83   : > { %v401_v5 = vpop.permute.xlu1 %400  ;;  %v392_v6 = vpop.permute.xlu0 %391 }
  0x84   : > { %398 = vst.msk [vmem:[#allocation2 + $0x8] sm:$0xff] %vm397_vm1, %v392_v6 }
  0x85   : > { %407 = vst.msk [vmem:[#allocation2 + $0x8] sm:$0xff] %vm406_vm2, %v401_v5 }
  0x87   : > { %v403_v7 = vpop.permute.xlu1 %402  ;;  %v394_v8 = vpop.permute.xlu0 %393 }
  0x88   : > { %399 = vst.msk [vmem:[#allocation2 + $0x20] sm:$0xff] %vm397_vm1, %v394_v8 }
  0x89   : > { %408 = vst.msk [vmem:[#allocation2 + $0x20] sm:$0xff] %vm406_vm2, %v403_v7  ;;  %vm492_vm2 = vcmask 556448  }
  0x8b   : > { %v412_v9 = vpop.permute.xlu1 %411  ;;  %v410_v10 = vpop.permute.xlu0 %409 }
  0x8c   : > { %417 = vst.msk [vmem:[#allocation2 + $0x20] sm:$0xff] %vm415_vm3, %v412_v9  ;;  %416 = vst.msk [vmem:[#allocation2 + $0x8] sm:$0xff] %vm415_vm3, %v410_v10  ;;  %vm388_vm3 = vcmask 1032048   ;;  %v5164_v10 = vld [vmem:[%s6604_s1 + $0x4] sm:$0xf] }
  0x8f   : > { %v423_v11 = vpop.permute.xlu1 %422  ;;  %v421_v12 = vpop.permute.xlu0 %420 }
  0x90   : > { %428 = vst.msk [vmem:[#allocation2 + $0x20] sm:$0xff] %vm426_vm4, %v423_v11  ;;  %427 = vst.msk [vmem:[#allocation2 + $0x8] sm:$0xff] %vm426_vm4, %v421_v12  ;;  %vm524_vm4 = vcmask 728064  }
  0x93   : > { %v349_v13 = vpop.permute.xlu1 %348  ;;  %v347_v14 = vpop.permute.xlu0 %346 }
  0x94   : > { %354 = vst.msk [vmem:[#allocation2 + $0x18] sm:$0xff] %vm352_vm5, %v349_v13  ;;  %353 = vst.msk [vmem:[#allocation2] sm:$0xff] %vm352_vm5, %v347_v14  ;;  %vm619_vm5 = vcmask 736256  }
  0x97   : > { %v432_v15 = vpop.permute.xlu1 %431  ;;  %v430_v16 = vpop.permute.xlu0 %429 }
  0x98   : > { %437 = vst.msk [vmem:[#allocation2 + $0x20] sm:$0xff] %vm435_vm6, %v432_v15  ;;  %436 = vst.msk [vmem:[#allocation2 + $0x8] sm:$0xff] %vm435_vm6, %v430_v16  ;;  %vm716_vm6 = vcmask 719872  }
  0x9b   : > { %v459_v17 = vpop.permute.xlu1 %458  ;;  %v457_v18 = vpop.permute.xlu0 %456 }
  0x9c   : > { %467 = vst.msk [vmem:[#allocation2 + $0x28] sm:$0xff] %vm464_vm7, %v459_v17  ;;  %465 = vst.msk [vmem:[#allocation2 + $0x10] sm:$0xff] %vm464_vm7, %v457_v18  ;;  %vm815_vm7 = vcmask 588800  }
  0x9f   : > { %v358_v19 = vpop.permute.xlu1 %357  ;;  %v356_v20 = vpop.permute.xlu0 %355 }
  0xa0   : > { %363 = vst.msk [vmem:[#allocation2 + $0x18] sm:$0xff] %vm361_vm8, %v358_v19  ;;  %362 = vst.msk [vmem:[#allocation2] sm:$0xff] %vm361_vm8, %v356_v20  ;;  %vm914_vm8 = vcmask 580608  }
  0xa3   : > { %v441_v21 = vpop.permute.xlu1 %440  ;;  %v439_v22 = vpop.permute.xlu0 %438 }
  0xa4   : > { %446 = vst.msk [vmem:[#allocation2 + $0x20] sm:$0xff] %vm444_vm9, %v441_v21  ;;  %445 = vst.msk [vmem:[#allocation2 + $0x8] sm:$0xff] %vm444_vm9, %v439_v22  ;;  %vm1013_vm9 = vcmask 572416  }
  0xa7   : > { %v471_v23 = vpop.permute.xlu1 %470  ;;  %v469_v24 = vpop.permute.xlu0 %468 }
  0xa8   : > { %476 = vst.msk [vmem:[#allocation2 + $0x28] sm:$0xff] %vm474_vm10, %v471_v23  ;;  %475 = vst.msk [vmem:[#allocation2 + $0x10] sm:$0xff] %vm474_vm10, %v469_v24  ;;  %vm1112_vm10 = vcmask 441344  }
  0xab   : > { %v367_v25 = vpop.permute.xlu1 %366  ;;  %v365_v26 = vpop.permute.xlu0 %364 }
  0xac   : > { %372 = vst.msk [vmem:[#allocation2 + $0x18] sm:$0xff] %vm370_vm11, %v367_v25  ;;  %371 = vst.msk [vmem:[#allocation2] sm:$0xff] %vm370_vm11, %v365_v26  ;;  %vm1211_vm11 = vcmask 433152  }
  0xaf   : > { %v450_v27 = vpop.permute.xlu1 %449  ;;  %v448_v28 = vpop.permute.xlu0 %447 }
  0xb0   : > { %455 = vst.msk [vmem:[#allocation2 + $0x20] sm:$0xff] %vm453_vm12, %v450_v27  ;;  %454 = vst.msk [vmem:[#allocation2 + $0x8] sm:$0xff] %vm453_vm12, %v448_v28  ;;  %vm1310_vm12 = vcmask 424960  }
  0xb1   : > { %466 = vst.msk [vmem:[#allocation2 + $0x20] sm:$0xff] %vm462_vm13, %v459_v17  ;;  %463 = vst.msk [vmem:[#allocation2 + $0x8] sm:$0xff] %vm462_vm13, %v457_v18  ;;  %vm1411_vm13 = vcmask 551936  }
  0xb2   : > { %1412 = vst.msk [vmem:[#allocation3 + $0x8] sm:$0xf] %vm1411_vm13, %v5776_v0  ;;  %3097 = vst.msk [vmem:[#allocation5 + $0x8] sm:$0xf] %vm1411_vm13, %v5776_v0 }
  0xb3   : > { %v480_v29 = vpop.permute.xlu1 %479  ;;  %v478_v30 = vpop.permute.xlu0 %477 }
  0xb4   : > { %485 = vst.msk [vmem:[#allocation2 + $0x28] sm:$0xff] %vm483_vm14, %v480_v29  ;;  %484 = vst.msk [vmem:[#allocation2 + $0x10] sm:$0xff] %vm483_vm14, %v478_v30  ;;  %v503_v30 = vld [vmem:[%s6604_s1] sm:$0xf]  ;;  %vm1423_vm14 = vcmask 1043760  }
  0xb7   : > { %v376_v31 = vpop.permute.xlu1 %375  ;;  %v374_v32 = vpop.permute.xlu0 %373 }
  0xb8   : > { %381 = vst.msk [vmem:[#allocation2 + $0x18] sm:$0xff] %vm379_vm15, %v376_v31  ;;  %380 = vst.msk [vmem:[#allocation2] sm:$0xff] %vm379_vm15, %v374_v32  ;;  %v5898_v33 = vld [vmem:[#allocation2 + $0x20] sm:$0xff]  ;;  %v5900_v34 = vld [vmem:[#allocation2 + $0x8] sm:$0xff]  ;;  %vm1424_vm15 = vcmask 1047556  }
  0xb9   : > { %v5471_v35 = vpack.c.bf16 %v5898_v33, %v5900_v34  ;;  %vm6046_vm13 = vmor %vm1424_vm15, %vm1423_vm14  ;;  %vm1445_vm14 = vcmask 1043456   ;;  %vm1441_vm15 = vcmask 31744  }
  0xbb   : > { %v489_v36 = vpop.permute.xlu1 %488  ;;  %v487_v37 = vpop.permute.xlu0 %486 }
  0xbc   : > { %494 = vst.msk [vmem:[#allocation2 + $0x28] sm:$0xff] %vm492_vm2, %v489_v36  ;;  %493 = vst.msk [vmem:[#allocation2 + $0x10] sm:$0xff] %vm492_vm2, %v487_v37  ;;  %vm1419_vm2 = vcmask 310272  }
  0xbf   : > { %v385_v38 = vpop.permute.xlu1 %384  ;;  %v383_v39 = vpop.permute.xlu0 %382 }
  0xc0   : > { %390 = vst.msk [vmem:[#allocation2 + $0x18] sm:$0xff] %vm388_vm3, %v385_v38  ;;  %389 = vst.msk [vmem:[#allocation2] sm:$0xff] %vm388_vm3, %v383_v39  ;;  %vm1427_vm3 = vcmask 240640  }
  0xc3   : > { %v500_v40 = vld [vmem:[#allocation2 + $0x28] sm:$0xff]  ;;  %v497_v41 = vld [vmem:[#allocation2 + $0x10] sm:$0xff] }
  0xc4   : > { %v5635_v42 = vpack.i.bf16 %v500_v40, %v5898_v33  ;;  %v5630_v43 = vpack.i.bf16 %v497_v41, %v5900_v34  ;;  %v5918_v48 = vpack.c.bf16 %v500_v40, %v497_v41  ;;  %v4777_v33 = vld [vmem:[%s6609_s6] sm:$0xff] }
  0xc6   : > { %5636 = vrot.lane.b32.xlu1 %v5635_v42, %s5793_s12  ;;  %5631 = vrot.lane.b32.xlu0 %v5630_v43, %s5793_s12 }
  0xc7   : > { %v5908_v44 = vld [vmem:[#allocation2] sm:$0xff]  ;;  %v5910_v45 = vld [vmem:[#allocation2 + $0x18] sm:$0xff] }
  0xc8   : > { %v5640_v46 = vpack.i.bf16 %v5910_v45, %v5908_v44  ;;  %v5473_v47 = vpack.c.bf16 %v5910_v45, %v5908_v44  ;;  %v5304_v45 = vld [vmem:[%s6607_s4 + $0x68] sm:$0xff] }
  0xca   : > { %5646 = vrot.lane.b32.xlu1 %v5630_v43, %s5794_s13  ;;  %5641 = vrot.lane.b32.xlu0 %v5640_v46, %s5793_s12 }
  0xce   : > { %5656 = vrot.lane.b32.xlu1 %v5640_v46, %s5794_s13  ;;  %5651 = vrot.lane.b32.xlu0 %v5635_v42, %s5794_s13 }
  0xd2   : > { %5666 = vrot.lane.b32.xlu1 %v5635_v42, %s5795_s14  ;;  %5661 = vrot.lane.b32.xlu0 %v5630_v43, %s5795_s14 }
  0xd6   : > { %5676 = vrot.lane.b32.xlu1 %v5630_v43, %s5796_s15  ;;  %5671 = vrot.lane.b32.xlu0 %v5640_v46, %s5795_s14 }
  0xda   : > { %5686 = vrot.lane.b32.xlu1 %v5640_v46, %s5796_s15  ;;  %5681 = vrot.lane.b32.xlu0 %v5635_v42, %s5796_s15 }
  0xde   : > { %5696 = vrot.lane.b32.xlu1 %v5635_v42, %s5797_s16  ;;  %5691 = vrot.lane.b32.xlu0 %v5630_v43, %s5797_s16 }
  0xe2   : > { %5706 = vrot.lane.b32.xlu1 %v5630_v43, %s5798_s20  ;;  %5701 = vrot.lane.b32.xlu0 %v5640_v46, %s5797_s16 }
  0xe6   : > { %5716 = vrot.lane.b32.xlu1 %v5640_v46, %s5798_s20  ;;  %5711 = vrot.lane.b32.xlu0 %v5635_v42, %s5798_s20 }
  0xea   : > { %5726 = vrot.lane.b32.xlu1 %v5635_v42, %s5780_s18  ;;  %5721 = vrot.lane.b32.xlu0 %v5630_v43, %s5780_s18 }
  0xee   : > { %5736 = vrot.lane.b32.xlu1 %v5630_v43, %s5799_s21  ;;  %5731 = vrot.lane.b32.xlu0 %v5640_v46, %s5780_s18 }
  0xf2   : > { %5746 = vrot.lane.b32.xlu1 %v5640_v46, %s5799_s21  ;;  %5741 = vrot.lane.b32.xlu0 %v5635_v42, %s5799_s21 }
  0xf6   : > { %5756 = vrot.lane.b32.xlu1 %v5635_v42, %s5779_s17  ;;  %5751 = vrot.lane.b32.xlu0 %v5630_v43, %s5779_s17 }
  0xfa   : > { %5761 = vrot.lane.b32.xlu0 %v5640_v46, %s5779_s17 }
 0x138   : > { %v5637_v49 = vpop.permute.xlu1 %5636  ;;  %v5632_v50 = vpop.permute.xlu0 %5631 }
 0x139   : > { %v5639_v51 = vunpack.i.h.bf16 %v5637_v49  ;;  %v5638_v52 = vunpack.i.l.bf16 %v5637_v49  ;;  %v5634_v53 = vunpack.i.h.bf16 %v5632_v50  ;;  %v5633_v54 = vunpack.i.l.bf16 %v5632_v50 }
 0x13b   : > { %v526_v55 = vsel %vm524_vm4, %v5633_v54, %v5634_v53  ;;  %v528_v56 = vsel %vm524_vm4, %v5638_v52, %v5639_v51 }
 0x13c   : > { %v5647_v57 = vpop.permute.xlu1 %5646  ;;  %v5642_v58 = vpop.permute.xlu0 %5641  ;;  %v5435_v59 = vpack.c.bf16 %v528_v56, %v526_v55 }
 0x13d   : > { %v5644_v60 = vunpack.i.h.bf16 %v5642_v58  ;;  %v5643_v61 = vunpack.i.l.bf16 %v5642_v58  ;;  %v5649_v62 = vunpack.i.h.bf16 %v5647_v57  ;;  %v5648_v63 = vunpack.i.l.bf16 %v5647_v57 }
 0x13e   : > { %5436 = vmatprep.subr.bf16.mxu0 %v5435_v59 }
 0x13f   : > { %v525_v1 = vsel %vm524_vm4, %v5643_v61, %v5633_v54  ;;  %v527_v2 = vsel %vm524_vm4, %v5644_v60, %v5638_v52  ;;  %v621_v13 = vsel %vm619_vm5, %v5648_v63, %v5649_v62  ;;  %v5167_v60 = vld [vmem:[%s6604_s1 + $0x8] sm:$0xf] }
 0x140   : > { %v5657_v3 = vpop.permute.xlu1 %5656  ;;  %v5652_v4 = vpop.permute.xlu0 %5651  ;;  %v5437_v5 = vpack.c.bf16 %v527_v2, %v525_v1 }
 0x141   : > { %v5659_v6 = vunpack.i.h.bf16 %v5657_v3  ;;  %v5658_v7 = vunpack.i.l.bf16 %v5657_v3  ;;  %v5654_v8 = vunpack.i.h.bf16 %v5652_v4  ;;  %v5653_v9 = vunpack.i.l.bf16 %v5652_v4 }
 0x142   : > { %5438 = vmatpush1.bf16.msra.mxu0 %v5437_v5 }
 0x143   : > { %v620_v11 = vsel %vm619_vm5, %v5658_v7, %v5648_v63  ;;  %v622_v12 = vsel %vm619_vm5, %v5659_v6, %v5653_v9  ;;  %v623_v14 = vsel %vm619_vm5, %v5653_v9, %v5654_v8 }
 0x144   : > { %v5667_v15 = vpop.permute.xlu1 %5666  ;;  %v5662_v16 = vpop.permute.xlu0 %5661  ;;  %v5439_v17 = vpack.c.bf16 %v623_v14, %v621_v13  ;;  %v5441_v18 = vpack.c.bf16 %v622_v12, %v620_v11  ;;  %v5169_v14 = vld [vmem:[%s6604_s1 + $0xc] sm:$0xf] }
 0x145   : > { %v5669_v19 = vunpack.i.h.bf16 %v5667_v15  ;;  %v5668_v20 = vunpack.i.l.bf16 %v5667_v15  ;;  %v5664_v21 = vunpack.i.h.bf16 %v5662_v16  ;;  %v5663_v22 = vunpack.i.l.bf16 %v5662_v16  ;;  %5165 = vmatmul.mubr.msk.f32.vlgmr.msra.gmra.mrb[0].mxu0 %vm397_vm1, %v5164_v10 }
 0x146   : > { %5440 = vmatprep.subr.bf16.mxu0 %v5439_v17  ;;  %695 = vmatprep.mubr.f32.mxu0 %v5776_v0 }
 0x147   : > { %5442 = vmatpush1.bf16.msra.mxu0 %v5441_v18  ;;  %v718_v23 = vsel %vm716_vm6, %v5663_v22, %v5664_v21  ;;  %v720_v24 = vsel %vm716_vm6, %v5668_v20, %v5669_v19 }
 0x148   : > { %v5677_v25 = vpop.permute.xlu1 %5676  ;;  %v5672_v26 = vpop.permute.xlu0 %5671  ;;  %v5443_v27 = vpack.c.bf16 %v720_v24, %v718_v23 }
 0x149   : > { %v5674_v28 = vunpack.i.h.bf16 %v5672_v26  ;;  %v5673_v29 = vunpack.i.l.bf16 %v5672_v26  ;;  %v5679_v31 = vunpack.i.h.bf16 %v5677_v25  ;;  %v5678_v32 = vunpack.i.l.bf16 %v5677_v25 }
 0x14a   : > { %5444 = vmatprep.subr.bf16.mxu0 %v5443_v27 }
 0x14b   : > { %v719_v36 = vsel %vm716_vm6, %v5674_v28, %v5668_v20  ;;  %v717_v37 = vsel %vm716_vm6, %v5673_v29, %v5663_v22  ;;  %v817_v49 = vsel %vm815_vm7, %v5678_v32, %v5679_v31  ;;  %v5171_v31 = vld [vmem:[%s6604_s1 + $0x10] sm:$0xf] }
 0x14c   : > { %v5445_v38 = vpack.c.bf16 %v719_v36, %v717_v37  ;;  %v5687_v39 = vpop.permute.xlu1 %5686  ;;  %v5682_v40 = vpop.permute.xlu0 %5681 }
 0x14d   : > { %v5689_v41 = vunpack.i.h.bf16 %v5687_v39  ;;  %v5688_v42 = vunpack.i.l.bf16 %v5687_v39  ;;  %v5684_v43 = vunpack.i.h.bf16 %v5682_v40  ;;  %v5683_v46 = vunpack.i.l.bf16 %v5682_v40  ;;  %5166 = vmatmul.mubr.msk.f32.vlgmr.msra.gmra.mrb[0].mxu0 %vm397_vm1, %v503_v30 }
 0x14e   : > { %5446 = vmatpush1.bf16.msra.mxu0 %v5445_v38  ;;  %792 = vmatprep.mubr.f32.mxu0 %v5776_v0 }
 0x14f   : > { %v819_v50 = vsel %vm815_vm7, %v5683_v46, %v5684_v43  ;;  %v816_v51 = vsel %vm815_vm7, %v5688_v42, %v5678_v32  ;;  %v818_v52 = vsel %vm815_vm7, %v5689_v41, %v5683_v46 }
 0x150   : > { %v5697_v53 = vpop.permute.xlu1 %5696  ;;  %v5692_v54 = vpop.permute.xlu0 %5691  ;;  %v5447_v55 = vpack.c.bf16 %v819_v50, %v817_v49  ;;  %v5449_v63 = vpack.c.bf16 %v818_v52, %v816_v51 }
 0x151   : > { %v5699_v56 = vunpack.i.h.bf16 %v5697_v53  ;;  %v5698_v57 = vunpack.i.l.bf16 %v5697_v53  ;;  %v5694_v58 = vunpack.i.h.bf16 %v5692_v54  ;;  %v5693_v59 = vunpack.i.l.bf16 %v5692_v54  ;;  %v5173_v53 = vld [vmem:[%s6604_s1 + $0x14] sm:$0xf] }
 0x152   : > { %5448 = vmatprep.subr.bf16.mxu0 %v5447_v55 }
 0x153   : > { %v916_v61 = vsel %vm914_vm8, %v5693_v59, %v5694_v58  ;;  %v918_v62 = vsel %vm914_vm8, %v5698_v57, %v5699_v56 }
 0x154   : > { %v5707_v1 = vpop.permute.xlu1 %5706  ;;  %v5702_v2 = vpop.permute.xlu0 %5701  ;;  %v5451_v3 = vpack.c.bf16 %v918_v62, %v916_v61 }
 0x155   : > { %v5704_v4 = vunpack.i.h.bf16 %v5702_v2  ;;  %v5703_v5 = vunpack.i.l.bf16 %v5702_v2  ;;  %5168 = vmatmul.mubr.msk.f32.vlgmr.msra.gmra.mrb[0].mxu0 %vm397_vm1, %v5167_v60  ;;  %v5709_v6 = vunpack.i.h.bf16 %v5707_v1  ;;  %v5708_v7 = vunpack.i.l.bf16 %v5707_v1 }
 0x156   : > { %5450 = vmatpush1.bf16.msra.mxu0 %v5449_v63  ;;  %891 = vmatprep.mubr.f32.mxu0 %v5776_v0 }
 0x157   : > { %5452 = vmatprep.subr.bf16.mxu0 %v5451_v3  ;;  %v917_v10 = vsel %vm914_vm8, %v5704_v4, %v5698_v57  ;;  %v915_v11 = vsel %vm914_vm8, %v5703_v5, %v5693_v59  ;;  %v1015_v15 = vsel %vm1013_vm9, %v5708_v7, %v5709_v6  ;;  %v5175_v6 = vld [vmem:[%s6604_s1 + $0x18] sm:$0xf] }
 0x158   : > { %v5717_v8 = vpop.permute.xlu1 %5716  ;;  %v5712_v9 = vpop.permute.xlu0 %5711  ;;  %v5453_v17 = vpack.c.bf16 %v917_v10, %v915_v11 }
 0x159   : > { %v5714_v12 = vunpack.i.h.bf16 %v5712_v9  ;;  %v5713_v13 = vunpack.i.l.bf16 %v5712_v9  ;;  %v5719_v21 = vunpack.i.h.bf16 %v5717_v8  ;;  %v5718_v22 = vunpack.i.l.bf16 %v5717_v8 }
 0x15b   : > { %v1017_v16 = vsel %vm1013_vm9, %v5713_v13, %v5714_v12  ;;  %v1014_v29 = vsel %vm1013_vm9, %v5718_v22, %v5708_v7  ;;  %v1016_v30 = vsel %vm1013_vm9, %v5719_v21, %v5713_v13  ;;  %v501_v21 = vld [vmem:[%s6610_s7] sm:$0x3] }
 0x15c   : > { %v5727_v18 = vpop.permute.xlu1 %5726  ;;  %v5722_v19 = vpop.permute.xlu0 %5721  ;;  %v5455_v20 = vpack.c.bf16 %v1017_v16, %v1015_v15  ;;  %v5457_v37 = vpack.c.bf16 %v1016_v30, %v1014_v29  ;;  %v5177_v15 = vld [vmem:[%s6604_s1 + $0x1c] sm:$0xf] }
 0x15d   : > { %5170 = vmatmul.mubr.msk.f32.vlgmr.msra.gmra.mrb[0].mxu0 %vm397_vm1, %v5169_v14  ;;  %v5729_v23 = vunpack.i.h.bf16 %v5727_v18  ;;  %v5728_v24 = vunpack.i.l.bf16 %v5727_v18  ;;  %v5724_v25 = vunpack.i.h.bf16 %v5722_v19  ;;  %v5723_v26 = vunpack.i.l.bf16 %v5722_v19 }
 0x15e   : > { %5454 = vmatpush1.bf16.msra.mxu0 %v5453_v17  ;;  %990 = vmatprep.mubr.f32.mxu0 %v5776_v0  ;;  %v5179_v17 = vld [vmem:[%s6604_s1 + $0x20] sm:$0xf]  ;;  %v1398_v18 = vlaneseq }
 0x15f   : > { %5456 = vmatprep.subr.bf16.mxu0 %v5455_v20  ;;  %v1114_v32 = vsel %vm1112_vm10, %v5723_v26, %v5724_v25  ;;  %v1116_v36 = vsel %vm1112_vm10, %v5728_v24, %v5729_v23 }
 0x160   : > { %v5737_v27 = vpop.permute.xlu1 %5736  ;;  %v5732_v28 = vpop.permute.xlu0 %5731  ;;  %v5459_v42 = vpack.c.bf16 %v1116_v36, %v1114_v32  ;;  %v6026_v19 = vshrl.u32 %v1398_v18, 7 }
 0x161   : > { %v5734_v39 = vunpack.i.h.bf16 %v5732_v28  ;;  %v5733_v40 = vunpack.i.l.bf16 %v5732_v28  ;;  %v5739_v49 = vunpack.i.h.bf16 %v5737_v27  ;;  %v5738_v50 = vunpack.i.l.bf16 %v5737_v27 }
 0x162   : > { %v6029_v20 = vsub.s32 0, %v6026_v19  ;;  %v6035_v22 = vsub.s32 1, %v6026_v19 }
 0x163   : > { %v1115_v51 = vsel %vm1112_vm10, %v5734_v39, %v5728_v24  ;;  %v1113_v52 = vsel %vm1112_vm10, %v5733_v40, %v5723_v26  ;;  %v1213_v58 = vsel %vm1211_vm11, %v5738_v50, %v5739_v49 }
 0x164   : > { %v5742_v38 = vpop.permute.xlu0 %5741  ;;  %v5747_v41 = vpop.permute.xlu1 %5746  ;;  %v5461_v57 = vpack.c.bf16 %v1115_v51, %v1113_v52  ;;  %v6038_v23 = vrot.slane %v501_v21, %v6029_v20  ;;  %v6041_v25 = vrot.slane %v501_v21, %v6035_v22 }
 0x165   : > { %5172 = vmatmul.mubr.msk.f32.vlgmr.msra.gmra.mrb[0].mxu0 %vm397_vm1, %v5171_v31  ;;  %v5744_v43 = vunpack.i.h.bf16 %v5742_v38  ;;  %v5743_v46 = vunpack.i.l.bf16 %v5742_v38  ;;  %v5749_v59 = vunpack.i.h.bf16 %v5747_v41  ;;  %v5748_v60 = vunpack.i.l.bf16 %v5747_v41 }
 0x166   : > { %5458 = vmatpush1.bf16.msra.mxu0 %v5457_v37  ;;  %1089 = vmatprep.mubr.f32.mxu0 %v5776_v0 }
 0x167   : > { %5460 = vmatprep.subr.bf16.mxu0 %v5459_v42  ;;  %v1215_v54 = vsel %vm1211_vm11, %v5743_v46, %v5744_v43  ;;  %v1212_v3 = vsel %vm1211_vm11, %v5748_v60, %v5738_v50  ;;  %v1214_v4 = vsel %vm1211_vm11, %v5749_v59, %v5743_v46  ;;  %v5181_v46 = vld [vmem:[%s6605_s2 + $0x1] sm:$0x1] }
 0x168   : > { %v5757_v55 = vpop.permute.xlu1 %5756  ;;  %v5752_v56 = vpop.permute.xlu0 %5751  ;;  %v5463_v61 = vpack.c.bf16 %v1215_v54, %v1213_v58  ;;  %v5465_v9 = vpack.c.bf16 %v1214_v4, %v1212_v3 }
 0x169   : > { %v5759_v62 = vunpack.i.h.bf16 %v5757_v55  ;;  %v5758_v63 = vunpack.i.l.bf16 %v5757_v55  ;;  %v5754_v1 = vunpack.i.h.bf16 %v5752_v56  ;;  %v5753_v2 = vunpack.i.l.bf16 %v5752_v56  ;;  %v1431_v55 = vld [vmem:[%s6605_s2] sm:$0x1] }
 0x16b   : > { %v1312_v7 = vsel %vm1310_vm12, %v5753_v2, %v5754_v1  ;;  %v1314_v8 = vsel %vm1310_vm12, %v5758_v63, %v5759_v62  ;;  %v5188_v62 = vld [vmem:[%s6605_s2 + $0x2] sm:$0x1] }
 0x16c   : > { %v5762_v5 = vpop.permute.xlu0 %5761  ;;  %v5467_v12 = vpack.c.bf16 %v1314_v8, %v1312_v7 }
 0x16d   : > { %5174 = vmatmul.mubr.msk.f32.vlgmr.msra.gmra.mrb[0].mxu0 %vm397_vm1, %v5173_v53  ;;  %v5764_v10 = vunpack.i.h.bf16 %v5762_v5  ;;  %v5763_v11 = vunpack.i.l.bf16 %v5762_v5 }
 0x16e   : > { %5462 = vmatpush1.bf16.msra.mxu0 %v5461_v57  ;;  %1188 = vmatprep.mubr.f32.mxu0 %v5776_v0 }
 0x16f   : > { %5464 = vmatprep.subr.bf16.mxu0 %v5463_v61  ;;  %v1313_v13 = vsel %vm1310_vm12, %v5764_v10, %v5758_v63  ;;  %v1311_v14 = vsel %vm1310_vm12, %v5763_v11, %v5753_v2 }
 0x170   : > { %v5469_v16 = vpack.c.bf16 %v1313_v13, %v1311_v14 }
 0x175   : > { %5176 = vmatmul.mubr.msk.f32.vlgmr.msra.gmra.mrb[0].mxu0 %vm397_vm1, %v5175_v6  ;;  %v5192_v6 = vld [vmem:[%s6605_s2 + $0x3] sm:$0x1] }
 0x176   : > { %5466 = vmatpush1.bf16.msra.mxu0 %v5465_v9  ;;  %1287 = vmatprep.mubr.f32.mxu0 %v5776_v0 }
 0x177   : > { %5468 = vmatprep.subr.bf16.mxu0 %v5467_v12  ;;  %v5196_v12 = vld [vmem:[%s6605_s2 + $0x4] sm:$0x1] }
 0x17d   : > { %5178 = vmatmul.mubr.msk.f32.vlgmr.msra.gmra.mrb[0].mxu0 %vm397_vm1, %v5177_v15 }
 0x17e   : > { %5470 = vmatpush1.bf16.msra.mxu0 %v5469_v16  ;;  %1386 = vmatprep.mubr.f32.mxu0 %v5776_v0  ;;  %v6124_v16 = vld [vmem:[#allocation5] sm:$0xff] }
 0x185   : > { %5180 = vmatmul.mubr.msk.f32.vlgmr.msra.gmra.mrb[0].mxu0 %vm397_vm1, %v5179_v17  ;;  %v5200_v17 = vld [vmem:[%s6605_s2 + $0x5] sm:$0x1] }
 0x258   : > { %v1388_v24 = vpop.f32.mrb[0].mxu0 }
 0x259   : > { %v1395_v26 = vmax.f32 %v1388_v24, 0.0  ;;  %v1390_v27 = vpop.f32.mrb[1].mxu0 }
 0x25a   : > { %v1396_v28 = vmax.f32 %v1390_v27, 0.0 }
 0x25b   : > { %v1408_v29 = vmul.f32 %v6038_v23, %v1395_v26 }
 0x25c   : > { %v1409_v30 = vmul.f32 %v6041_v25, %v1396_v28  ;;  %v5204_v28 = vld [vmem:[%s6605_s2 + $0x6] sm:$0x1] }
 0x25e   : > { %v1415_v31 = vcombine.low %v1408_v29, %v1409_v30 }
 0x260   : > { %1416 = vrot.lane.b32.xlu1 %v1415_v31, %s5781_s19 }
 0x2d2   : > { %v1417_v32 = vpop.permute.xlu1 %1416 }
 0x2d3   : > { %v1418_v37 = vrot.slane %v1417_v32, 4 }
 0x2d5   : > { %v1420_v38 = vsel %vm1419_vm2, %v1418_v37, %v1417_v32  ;;  %1428 = vst.msk [vmem:[#allocation3 + $0x8] sm:$0xf] %vm1427_vm3, %v1418_v37 }
 0x2d6   : > { %1426 = vst.msk [vmem:[#allocation3] sm:$0xff] %vm6046_vm13, %v1420_v38  ;;  %v5208_v38 = vld [vmem:[%s6605_s2 + $0x7] sm:$0x1] }
 0x2dc   : > { %v1430_v41 = vld [vmem:[#allocation3 + $0x8] sm:$0xf] }
 0x2dd   : > { %v1429_v39 = vld [vmem:[#allocation3] sm:$0xff] }
 0x2de   : > { %1436 = vrot.lane.b32.xlu0 %v1429_v39, %s5793_s12  ;;  %v1435_v40 = vcombine.high %v1429_v39, %v1429_v39 }
 0x2e0   : > { %1438 = vrot.lane.b32.xlu1 %v1435_v40, %s5793_s12 }
 0x2e2   : > { %1521 = vrot.lane.b32.xlu0 %v1429_v39, %s5794_s13 }
 0x2e4   : > { %1523 = vrot.lane.b32.xlu1 %v1435_v40, %s5794_s13 }
 0x2e6   : > { %1606 = vrot.lane.b32.xlu0 %v1429_v39, %s5795_s14 }
 0x2e8   : > { %1608 = vrot.lane.b32.xlu1 %v1435_v40, %s5795_s14 }
 0x2ea   : > { %1696 = vrot.lane.b32.xlu0 %v1435_v40, %s5796_s15 }
 0x2ec   : > { %1698 = vrot.lane.b32.xlu1 %v1430_v41, %s5796_s15 }
 0x2ee   : > { %1694 = vrot.lane.b32.xlu0 %v1429_v39, %s5796_s15  ;;  %s5802_s15 = smov 126  }
 0x2f0   : > { %1786 = vrot.lane.b32.xlu1 %v1435_v40, %s5797_s16 }
 0x2f2   : > { %1788 = vrot.lane.b32.xlu0 %v1430_v41, %s5797_s16 }
 0x2f4   : > { %1784 = vrot.lane.b32.xlu1 %v1429_v39, %s5797_s16  ;;  %s5803_s16 = smov 110  }
 0x2f6   : > { %1876 = vrot.lane.b32.xlu0 %v1435_v40, %s5798_s20 }
 0x2f8   : > { %1878 = vrot.lane.b32.xlu1 %v1430_v41, %s5798_s20 }
 0x2fa   : > { %1874 = vrot.lane.b32.xlu0 %v1429_v39, %s5798_s20  ;;  %s5804_s20 = smov 109  }
 0x2fc   : > { %1966 = vrot.lane.b32.xlu1 %v1435_v40, %s5780_s18 }
 0x2fe   : > { %1968 = vrot.lane.b32.xlu0 %v1430_v41, %s5780_s18 }
 0x300   : > { %1964 = vrot.lane.b32.xlu1 %v1429_v39, %s5780_s18  ;;  %s5801_s18 = smov 127  }
 0x302   : > { %2056 = vrot.lane.b32.xlu0 %v1435_v40, %s5799_s21 }
 0x304   : > { %2058 = vrot.lane.b32.xlu1 %v1430_v41, %s5799_s21 }
 0x306   : > { %2054 = vrot.lane.b32.xlu0 %v1429_v39, %s5799_s21  ;;  %s5805_s21 = smov 108  }
 0x308   : > { %2146 = vrot.lane.b32.xlu1 %v1435_v40, %s5779_s17  ;;  %v5212_v40 = vld [vmem:[%s6605_s2 + $0x8] sm:$0x1] }
 0x30a   : > { %2148 = vrot.lane.b32.xlu0 %v1430_v41, %s5779_s17  ;;  %v502_v41 = vld [vmem:[%s6611_s8] sm:$0x3] }
 0x30c   : > { %2144 = vrot.lane.b32.xlu1 %v1429_v39, %s5779_s17 }
 0x350   : > { %v1437_v42 = vpop.permute.xlu0 %1436 }
 0x352   : > { %v1439_v43 = vpop.permute.xlu1 %1438 }
 0x353   : > { %5182 = vmatprep.subr.msk.mxu1 %vm1445_vm14, %v1439_v43  ;;  %v1440_v49 = vsel %vm524_vm4, %v1437_v42, %v1439_v43  ;;  %vm2249_vm4 = vcmp.lt.s32.totalorder %v1398_v18, 324  ;;  %v5800_v42 = vmov 1966171168  }
 0x354   : > { %v1522_v50 = vpop.permute.xlu0 %1521  ;;  %5183 = vmatpush1.msk.msra.mxu1 %vm1445_vm14, %v1440_v49  ;;  %2251 = vst.msk [vmem:[#allocation4] sm:$0x7] %vm2249_vm4, %v6124_v16  ;;  %v2256_v43 = vunpack.c.l.s4 %v5800_v42  ;;  %vm2555_vm4 = vcmask 900096  }
 0x355   : > { %5184 = vmatmul.mubr.msk.f32.vlgmr.msra.gmra.mrb[0].mxu1 %vm1441_vm15, %v5181_v46  ;;  %v2238_v46 = vrot.slane %v502_v41, %v6029_v20 }
 0x356   : > { %v1524_v51 = vpop.permute.xlu1 %1523  ;;  %1597 = vmatprep.mubr.f32.mxu1 %v5776_v0 }
 0x357   : > { %v1525_v52 = vsel %vm619_vm5, %v1522_v50, %v1524_v51  ;;  %5185 = vmatprep.subr.msk.mxu1 %vm1445_vm14, %v1524_v51  ;;  %v2242_v50 = vrot.slane %v502_v41, %v6035_v22  ;;  %v2257_v51 = vunpack.c.0.s8 %v2256_v43  ;;  %v5235_v43 = vld [vmem:[%s6606_s3 + $0x14] sm:$0xf] }
 0x358   : > { %v1607_v53 = vpop.permute.xlu0 %1606  ;;  %5186 = vmatpush1.msk.msra.mxu1 %vm1445_vm14, %v1525_v52 }
 0x35a   : > { %v1609_v54 = vpop.permute.xlu1 %1608 }
 0x35b   : > { %v1610_v56 = vsel %vm716_vm6, %v1607_v53, %v1609_v54  ;;  %5189 = vmatprep.subr.msk.mxu1 %vm1445_vm14, %v1609_v54  ;;  %vm2274_vm6 = vcmp.ge.s32.totalorder %v1398_v18, 38 }
 0x35c   : > { %v1697_v57 = vpop.permute.xlu0 %1696 }
 0x35d   : > { %5187 = vmatmul.mubr.msk.f32.vlgmr.msra.gmra.mrb[0].mxu1 %vm1441_vm15, %v1431_v55 }
 0x35e   : > { %5190 = vmatpush1.msk.msra.mxu1 %vm1445_vm14, %v1610_v56  ;;  %v1699_v58 = vpop.permute.xlu1 %1698  ;;  %1682 = vmatprep.mubr.f32.mxu1 %v5776_v0 }
 0x35f   : > { %v1701_v59 = vsel %vm815_vm7, %v1697_v57, %v1699_v58 }
 0x360   : > { %v1695_v60 = vpop.permute.xlu0 %1694  ;;  %5193 = vmatprep.subr.msk.mxu1 %vm1445_vm14, %v1701_v59 }
 0x361   : > { %v1700_v1 = vsel %vm815_vm7, %v1695_v60, %v1697_v57  ;;  %v2260_v57 = vsub.s32 %v2257_v51, %v6026_v19  ;;  %vm2275_vm7 = vcmp.lt.s32.totalorder %v1398_v18, 248 }
 0x362   : > { %v1787_v61 = vpop.permute.xlu1 %1786 }
 0x364   : > { %v1789_v63 = vpop.permute.xlu0 %1788 }
 0x365   : > { %v1791_v2 = vsel %vm914_vm8, %v1787_v61, %v1789_v63  ;;  %5191 = vmatmul.mubr.msk.f32.vlgmr.msra.gmra.mrb[0].mxu1 %vm1441_vm15, %v5188_v62 }
 0x366   : > { %5194 = vmatpush1.msk.msra.mxu1 %vm1445_vm14, %v1700_v1  ;;  %v1785_v3 = vpop.permute.xlu1 %1784  ;;  %1773 = vmatprep.mubr.f32.mxu1 %v5776_v0 }
 0x367   : > { %5197 = vmatprep.subr.msk.mxu1 %vm1445_vm14, %v1791_v2  ;;  %v1790_v8 = vsel %vm914_vm8, %v1785_v3, %v1787_v61  ;;  %vm2276_vm8 = vmand %vm2274_vm6, %vm2275_vm7  ;;  %vm2646_vm6 = vcmask 891904   ;;  %vm2737_vm7 = vcmask 883712  }
 0x368   : > { %v1877_v4 = vpop.permute.xlu0 %1876 }
 0x36a   : > { %v1879_v5 = vpop.permute.xlu1 %1878 }
 0x36b   : > { %v1881_v9 = vsel %vm1013_vm9, %v1877_v4, %v1879_v5 }
 0x36c   : > { %v1875_v7 = vpop.permute.xlu0 %1874 }
 0x36d   : > { %5195 = vmatmul.mubr.msk.f32.vlgmr.msra.gmra.mrb[0].mxu1 %vm1441_vm15, %v5192_v6  ;;  %v1880_v13 = vsel %vm1013_vm9, %v1875_v7, %v1877_v4  ;;  %v2547_v4 = vsub.s32 2, %v6026_v19  ;;  %vm2295_vm9 = vcmask 1039360  }
 0x36e   : > { %5198 = vmatpush1.msk.msra.mxu1 %vm1445_vm14, %v1790_v8  ;;  %1863 = vmatprep.mubr.f32.mxu1 %v5776_v0  ;;  %v1967_v10 = vpop.permute.xlu1 %1966 }
 0x36f   : > { %5201 = vmatprep.subr.msk.mxu1 %vm1445_vm14, %v1881_v9 }
 0x370   : > { %v1969_v11 = vpop.permute.xlu0 %1968 }
 0x371   : > { %v1971_v15 = vsel %vm1112_vm10, %v1967_v10, %v1969_v11 }
 0x372   : > { %v1965_v14 = vpop.permute.xlu1 %1964 }
 0x373   : > { %v1970_v24 = vsel %vm1112_vm10, %v1965_v14, %v1967_v10  ;;  %vm2301_vm10 = vcmask 1040384   ;;  %v2279_v10 = vld [vmem:[%s6606_s3] sm:$0xf] }
 0x374   : > { %v2057_v0 = vpop.permute.xlu0 %2056 }
 0x375   : > { %5199 = vmatmul.mubr.msk.f32.vlgmr.msra.gmra.mrb[0].mxu1 %vm1441_vm15, %v5196_v12 }
 0x376   : > { %5202 = vmatpush1.msk.msra.mxu1 %vm1445_vm14, %v1880_v13  ;;  %1953 = vmatprep.mubr.f32.mxu1 %v6124_v16  ;;  %v2059_v21 = vpop.permute.xlu1 %2058 }
 0x377   : > { %5205 = vmatprep.subr.msk.mxu1 %vm1445_vm14, %v1971_v15  ;;  %v2061_v27 = vsel %vm1211_vm11, %v2057_v0, %v2059_v21 }
 0x378   : > { %v2055_v26 = vpop.permute.xlu0 %2054 }
 0x379   : > { %v2060_v31 = vsel %vm1211_vm11, %v2055_v26, %v2057_v0  ;;  %vm2297_vm11 = vcmask 7168   ;;  %v5223_v0 = vld [vmem:[%s6606_s3 + $0x8] sm:$0xf] }
 0x37a   : > { %v2147_v30 = vpop.permute.xlu1 %2146 }
 0x37c   : > { %v2149_v29 = vpop.permute.xlu0 %2148 }
 0x37d   : > { %5203 = vmatmul.mubr.msk.f32.vlgmr.msra.gmra.mrb[0].mxu1 %vm1441_vm15, %v5200_v17  ;;  %v2151_v32 = vsel %vm1310_vm12, %v2147_v30, %v2149_v29 }
 0x37e   : > { %5206 = vmatpush1.msk.msra.mxu1 %vm1445_vm14, %v1970_v24  ;;  %2043 = vmatprep.mubr.f32.mxu1 %v6124_v16  ;;  %v2145_v37 = vpop.permute.xlu1 %2144 }
 0x37f   : > { %5209 = vmatprep.subr.msk.mxu1 %vm1445_vm14, %v2061_v27  ;;  %v2150_v39 = vsel %vm1310_vm12, %v2145_v37, %v2147_v30  ;;  %vm2461_vm12 = vcmask 1031168  }
 0x385   : > { %5207 = vmatmul.mubr.msk.f32.vlgmr.msra.gmra.mrb[0].mxu1 %vm1441_vm15, %v5204_v28  ;;  %v5227_v28 = vld [vmem:[%s6606_s3 + $0xc] sm:$0xf] }
 0x386   : > { %5210 = vmatpush1.msk.msra.mxu1 %vm1445_vm14, %v2060_v31  ;;  %2133 = vmatprep.mubr.f32.mxu1 %v6124_v16 }
 0x387   : > { %5213 = vmatprep.subr.msk.mxu1 %vm1445_vm14, %v2151_v32 }
 0x38d   : > { %5211 = vmatmul.mubr.msk.f32.vlgmr.msra.gmra.mrb[0].mxu1 %vm1441_vm15, %v5208_v38  ;;  %v5231_v38 = vld [vmem:[%s6606_s3 + $0x10] sm:$0xf] }
 0x38e   : > { %5214 = vmatpush1.msk.msra.mxu1 %vm1445_vm14, %v2150_v39  ;;  %2223 = vmatprep.mubr.f32.mxu1 %v6124_v16 }
 0x395   : > { %5215 = vmatmul.mubr.msk.f32.vlgmr.msra.gmra.mrb[0].mxu1 %vm1441_vm15, %v5212_v40 }
 0x396   : > { %2370 = vmatprep.mubr.f32.mxu1 %v6124_v16 }
 0x468   : > { %v2225_v49 = vpop.f32.mrb[0].mxu1 }
 0x469   : > { %v2232_v52 = vmax.f32 %v2225_v49, 0.0  ;;  %v2227_v53 = vpop.f32.mrb[1].mxu1 }
 0x46a   : > { %v2233_v54 = vmax.f32 %v2227_v53, 0.0 }
 0x46b   : > { %v2245_v55 = vmul.f32 %v2238_v46, %v2232_v52  ;;  %v5239_v52 = vld [vmem:[%s6606_s3 + $0x18] sm:$0xf] }
 0x46c   : > { %v2246_v56 = vmul.f32 %v2242_v50, %v2233_v54 }
 0x46e   : > { %v2254_v58 = vcombine.low %v2245_v55, %v2246_v56 }
 0x470   : > { %v2261_v59 = vrot.slane %v2254_v58, %v2260_v57  ;;  %v5243_v58 = vld [vmem:[%s6606_s3 + $0x1c] sm:$0xf] }
 0x472   : > { %v2268_v60 = vrot.slane %v2261_v59, %v2260_v57 }
 0x474   : > { %2269 = vrot.lane.b32.xlu0 %v2268_v60, %s5781_s19  ;;  %v5247_v60 = vld [vmem:[%s6606_s3 + $0x20] sm:$0xf] }
 0x4e6   : > { %v2270_v61 = vpop.permute.xlu0 %2269 }
 0x4e7   : > { %v2271_v62 = vrot.slane %v2270_v61, 7 }
 0x4e9   : > { %v2272_v63 = vsel %vm1419_vm2, %v2271_v62, %v2270_v61 }
 0x4ea   : > { %2277 = vst.msk [vmem:[#allocation4] sm:$0x3] %vm2276_vm8, %v2272_v63  ;;  %vm2828_vm8 = vcmask 752640  }
 0x4f1   : > { %v2278_v1 = vld [vmem:[#allocation4] sm:$0x7] }
 0x4f2   : > { %v2286_v2 = vrot.slane %v2278_v1, %v6029_v20  ;;  %v2290_v3 = vrot.slane %v2278_v1, %v6035_v22  ;;  %v2548_v18 = vrot.slane %v2278_v1, %v2547_v4  ;;  %v5216_v22 = vld [vmem:[%s6606_s3 + $0x4] sm:$0xf] }
 0x4f4   : > { %2293 = vrot.lane.b32.xlu0 %v2290_v3, %s5801_s18  ;;  %2291 = vrot.lane.b32.xlu1 %v2286_v2, %s5801_s18 }
 0x4f8   : > { %2459 = vrot.lane.b32.xlu0 %v2290_v3, %s5802_s15  ;;  %2457 = vrot.lane.b32.xlu1 %v2286_v2, %s5802_s15 }
 0x4fc   : > { %2553 = vrot.lane.b32.xlu0 %v2548_v18, %s5803_s16  ;;  %2551 = vrot.lane.b32.xlu1 %v2290_v3, %s5803_s16 }
 0x500   : > { %2642 = vrot.lane.b32.xlu0 %v2290_v3, %s5804_s20  ;;  %2549 = vrot.lane.b32.xlu1 %v2286_v2, %s5803_s16 }
 0x504   : > { %2640 = vrot.lane.b32.xlu0 %v2286_v2, %s5804_s20  ;;  %2644 = vrot.lane.b32.xlu1 %v2548_v18, %s5804_s20 }
 0x508   : > { %2735 = vrot.lane.b32.xlu0 %v2548_v18, %s5805_s21  ;;  %2733 = vrot.lane.b32.xlu1 %v2290_v3, %s5805_s21 }
 0x50c   : > { %2824 = vrot.lane.b32.xlu0 %v2290_v3, %s5806_s24  ;;  %2731 = vrot.lane.b32.xlu1 %v2286_v2, %s5805_s21 }
 0x510   : > { %2822 = vrot.lane.b32.xlu0 %v2286_v2, %s5806_s24  ;;  %2826 = vrot.lane.b32.xlu1 %v2548_v18, %s5806_s24 }
 0x514   : > { %2917 = vrot.lane.b32.xlu0 %v2548_v18, %s5807_s25  ;;  %2915 = vrot.lane.b32.xlu1 %v2290_v3, %s5807_s25 }
 0x518   : > { %3006 = vrot.lane.b32.xlu0 %v2290_v3, %s5794_s13  ;;  %2913 = vrot.lane.b32.xlu1 %v2286_v2, %s5807_s25 }
 0x51c   : > { %3004 = vrot.lane.b32.xlu0 %v2286_v2, %s5794_s13  ;;  %3008 = vrot.lane.b32.xlu1 %v2548_v18, %s5794_s13  ;;  %v6278_v18 = vld [vmem:[%s6607_s4 + $0x10] sm:$0xff] }
 0x51d   : > { %5378 = vmatprep.mubr.msk.f32.mxu0 %vm1441_vm15, %v6278_v18 }
 0x566   : > { %v2294_v19 = vpop.permute.xlu0 %2293  ;;  %v2292_v20 = vpop.permute.xlu1 %2291 }
 0x567   : > { %v2296_v5 = vsel %vm2295_vm9, %v2292_v20, %v2294_v19  ;;  %5217 = vmatprep.subr.msk.mxu1 %vm2301_vm10, %v2294_v19 }
 0x568   : > { %5218 = vmatpush1.msk.msra.mxu1 %vm2301_vm10, %v2296_v5 }
 0x569   : > { %5219 = vmatmul.mubr.msk.f32.vlgmr.msra.gmra.mrb[2].mxu1 %vm2297_vm11, %v5216_v22  ;;  %5220 = vmatprep.subr.msk.mxu1 %vm2301_vm10, %v2290_v3 }
 0x56a   : > { %v2460_v6 = vpop.permute.xlu0 %2459  ;;  %5221 = vmatpush1.msk.msra.mxu1 %vm2301_vm10, %v2286_v2  ;;  %v2458_v7 = vpop.permute.xlu1 %2457  ;;  %2448 = vmatprep.mubr.f32.mxu1 %v6124_v16 }
 0x56b   : > { %5224 = vmatprep.subr.msk.mxu1 %vm2301_vm10, %v2460_v6  ;;  %v2462_v11 = vsel %vm2461_vm12, %v2458_v7, %v2460_v6  ;;  %v6337_v7 = vld [vmem:[%s6607_s4 + $0x18] sm:$0xff] }
 0x56e   : > { %v2554_v8 = vpop.permute.xlu0 %2553  ;;  %v2552_v9 = vpop.permute.xlu1 %2551 }
 0x56f   : > { %v2557_v12 = vsel %vm2555_vm4, %v2552_v9, %v2554_v8  ;;  %v6343_v8 = vld [vmem:[%s6607_s4] sm:$0xff] }
 0x571   : > { %5222 = vmatmul.mubr.msk.f32.vlgmr.msra.gmra.mrb[2].mxu1 %vm2297_vm11, %v2279_v10 }
 0x572   : > { %5225 = vmatpush1.msk.msra.mxu1 %vm2301_vm10, %v2462_v11  ;;  %v2643_v13 = vpop.permute.xlu0 %2642  ;;  %v2550_v14 = vpop.permute.xlu1 %2549  ;;  %2534 = vmatprep.mubr.f32.mxu1 %v6124_v16 }
 0x573   : > { %5228 = vmatprep.subr.msk.mxu1 %vm2301_vm10, %v2557_v12  ;;  %v2556_v21 = vsel %vm2555_vm4, %v2550_v14, %v2552_v9  ;;  %v6362_v14 = vld [vmem:[%s6607_s4 + $0x20] sm:$0xff] }
 0x576   : > { %v2645_v15 = vpop.permute.xlu1 %2644  ;;  %v2641_v17 = vpop.permute.xlu0 %2640 }
 0x577   : > { %v2648_v24 = vsel %vm2646_vm6, %v2643_v13, %v2645_v15  ;;  %v2647_v30 = vsel %vm2646_vm6, %v2641_v17, %v2643_v13  ;;  %v6357_v13 = vld [vmem:[%s6607_s4 + $0x8] sm:$0xff] }
 0x579   : > { %5226 = vmatmul.mubr.msk.f32.vlgmr.msra.gmra.mrb[2].mxu1 %vm2297_vm11, %v5223_v0 }
 0x57a   : > { %5229 = vmatpush1.msk.msra.mxu1 %vm2301_vm10, %v2556_v21  ;;  %v2734_v26 = vpop.permute.xlu1 %2733  ;;  %2629 = vmatprep.mubr.f32.mxu1 %v6124_v16  ;;  %v2736_v27 = vpop.permute.xlu0 %2735 }
 0x57b   : > { %5232 = vmatprep.subr.msk.mxu1 %vm2301_vm10, %v2648_v24  ;;  %v2739_v31 = vsel %vm2737_vm7, %v2734_v26, %v2736_v27 }
 0x57e   : > { %v2732_v29 = vpop.permute.xlu1 %2731  ;;  %v2825_v32 = vpop.permute.xlu0 %2824 }
 0x57f   : > { %v2738_v39 = vsel %vm2737_vm7, %v2732_v29, %v2734_v26  ;;  %v6377_v26 = vld [vmem:[%s6607_s4 + $0x28] sm:$0xff] }
 0x581   : > { %5230 = vmatmul.mubr.msk.f32.vlgmr.msra.gmra.mrb[2].mxu1 %vm2297_vm11, %v5227_v28 }
 0x582   : > { %5233 = vmatpush1.msk.msra.mxu1 %vm2301_vm10, %v2647_v30  ;;  %2720 = vmatprep.mubr.f32.mxu1 %v6124_v16  ;;  %v2827_v37 = vpop.permute.xlu1 %2826  ;;  %v2823_v40 = vpop.permute.xlu0 %2822  ;;  %v5276_v30 = vld [vmem:[%s6607_s4 + $0x30] sm:$0xff] }
 0x583   : > { %5236 = vmatprep.subr.msk.mxu1 %vm2301_vm10, %v2739_v31  ;;  %v2830_v41 = vsel %vm2828_vm8, %v2825_v32, %v2827_v37  ;;  %v2829_v49 = vsel %vm2828_vm8, %v2823_v40, %v2825_v32 }
 0x586   : > { %v2916_v42 = vpop.permute.xlu1 %2915  ;;  %v2918_v46 = vpop.permute.xlu0 %2917 }
 0x587   : > { %v2921_v51 = vsel %vm2919_vm0, %v2916_v42, %v2918_v46 }
 0x589   : > { %5234 = vmatmul.mubr.msk.f32.vlgmr.msra.gmra.mrb[2].mxu1 %vm2297_vm11, %v5231_v38  ;;  %v5277_v38 = vld [vmem:[%s6607_s4 + $0x38] sm:$0xff] }
 0x58a   : > { %5237 = vmatpush1.msk.msra.mxu1 %vm2301_vm10, %v2738_v39  ;;  %2811 = vmatprep.mubr.f32.mxu1 %v6124_v16  ;;  %v2914_v50 = vpop.permute.xlu1 %2913  ;;  %v3007_v54 = vpop.permute.xlu0 %3006 }
 0x58b   : > { %5240 = vmatprep.subr.msk.mxu1 %vm2301_vm10, %v2830_v41  ;;  %v2920_v55 = vsel %vm2919_vm0, %v2914_v50, %v2916_v42  ;;  %v5285_v50 = vld [vmem:[%s6607_s4 + $0x40] sm:$0xff] }
 0x58e   : > { %v3009_v53 = vpop.permute.xlu1 %3008  ;;  %v3005_v57 = vpop.permute.xlu0 %3004 }
 0x58f   : > { %v3011_v56 = vsel %vm619_vm5, %v3007_v54, %v3009_v53  ;;  %v3010_v59 = vsel %vm619_vm5, %v3005_v57, %v3007_v54  ;;  %v5286_v54 = vld [vmem:[%s6607_s4 + $0x48] sm:$0xff] }
 0x591   : > { %5238 = vmatmul.mubr.msk.f32.vlgmr.msra.gmra.mrb[2].mxu1 %vm2297_vm11, %v5235_v43 }
 0x592   : > { %5241 = vmatpush1.msk.msra.mxu1 %vm2301_vm10, %v2829_v49  ;;  %2902 = vmatprep.mubr.f32.mxu1 %v6124_v16 }
 0x593   : > { %5244 = vmatprep.subr.msk.mxu1 %vm2301_vm10, %v2921_v51 }
 0x599   : > { %5242 = vmatmul.mubr.msk.f32.vlgmr.msra.gmra.mrb[2].mxu1 %vm2297_vm11, %v5239_v52 }
 0x59a   : > { %5245 = vmatpush1.msk.msra.mxu1 %vm2301_vm10, %v2920_v55  ;;  %2993 = vmatprep.mubr.f32.mxu1 %v6124_v16 }
 0x59b   : > { %5248 = vmatprep.subr.msk.mxu1 %vm2301_vm10, %v3011_v56 }
 0x5a1   : > { %5246 = vmatmul.mubr.msk.f32.vlgmr.msra.gmra.mrb[2].mxu1 %vm2297_vm11, %v5243_v58 }
 0x5a2   : > { %5249 = vmatpush1.msk.msra.mxu1 %vm2301_vm10, %v3010_v59  ;;  %3083 = vmatprep.mubr.f32.mxu1 %v6124_v16 }
 0x5a9   : > { %5250 = vmatmul.mubr.msk.f32.vlgmr.msra.gmra.mrb[2].mxu1 %vm2297_vm11, %v5247_v60  ;;  %v5294_v60 = vld [vmem:[%s6607_s4 + $0x50] sm:$0xff] }
 0x5aa   : > { %3203 = vmatprep.mubr.f32.mxu1 %v6124_v16 }
 0x67c   : > { %v3085_v61 = vpop.f32.mrb[2].mxu1 }
 0x67d   : > { %v3092_v62 = vmax.f32 %v3085_v61, 0.0  ;;  %v3087_v63 = vpop.f32.mrb[3].mxu1 }
 0x67e   : > { %v3093_v1 = vmax.f32 %v3087_v63, 0.0  ;;  %v5295_v63 = vld [vmem:[%s6607_s4 + $0x58] sm:$0xff] }
 0x67f   : > { %v3094_v2 = vmul.f32 %v3092_v62, %v6038_v23 }
 0x680   : > { %v3095_v3 = vmul.f32 %v3093_v1, %v6041_v25 }
 0x682   : > { %v3100_v4 = vcombine.low %v3094_v2, %v3095_v3  ;;  %v5313_v2 = vld [vmem:[%s6607_s4 + $0x78] sm:$0xff] }
 0x684   : > { %3101 = vrot.lane.b32.xlu1 %v3100_v4, %s5781_s19 }
 0x6f6   : > { %v3102_v19 = vpop.permute.xlu1 %3101 }
 0x6f7   : > { %v3103_v20 = vrot.slane %v3102_v19, 4 }
 0x6f9   : > { %v3104_v22 = vsel %vm1419_vm2, %v3103_v20, %v3102_v19  ;;  %3108 = vst.msk [vmem:[#allocation5 + $0x8] sm:$0xf] %vm1427_vm3, %v3103_v20  ;;  %v5322_v19 = vld [vmem:[%s6607_s4 + $0x88] sm:$0xff] }
 0x6fa   : > { %3107 = vst.msk [vmem:[#allocation5] sm:$0xff] %vm6046_vm13, %v3104_v22 }
 0x700   : > { %v3110_v23 = vld [vmem:[#allocation5 + $0x8] sm:$0xf] }
 0x701   : > { %v6286_v25 = vld [vmem:[#allocation5] sm:$0xff]  ;;  %3462 = vrot.lane.b32.xlu1 %v3110_v23, %s5802_s15  ;;  %3123 = vrot.lane.b32.xlu0 %v3110_v23, %s5801_s18 }
 0x702   : > { %v6292_v5 = vcombine.high %v6286_v25, %v6286_v25 }
 0x705   : > { %3643 = vrot.lane.b32.xlu1 %v3110_v23, %s5803_s16  ;;  %3641 = vrot.lane.b32.xlu0 %v6292_v5, %s5803_s16 }
 0x709   : > { %3822 = vrot.lane.b32.xlu1 %v6292_v5, %s5804_s20  ;;  %3639 = vrot.lane.b32.xlu0 %v6286_v25, %s5803_s16 }
 0x70d   : > { %3820 = vrot.lane.b32.xlu1 %v6286_v25, %s5804_s20  ;;  %3824 = vrot.lane.b32.xlu0 %v3110_v23, %s5804_s20 }
 0x711   : > { %4005 = vrot.lane.b32.xlu1 %v3110_v23, %s5805_s21  ;;  %4003 = vrot.lane.b32.xlu0 %v6292_v5, %s5805_s21 }
 0x715   : > { %4184 = vrot.lane.b32.xlu1 %v6292_v5, %s5806_s24  ;;  %4001 = vrot.lane.b32.xlu0 %v6286_v25, %s5805_s21 }
 0x719   : > { %4182 = vrot.lane.b32.xlu1 %v6286_v25, %s5806_s24  ;;  %4186 = vrot.lane.b32.xlu0 %v3110_v23, %s5806_s24 }
 0x71d   : > { %3119 = vrot.lane.b32.xlu1 %v6286_v25, %s5801_s18  ;;  %3121 = vrot.lane.b32.xlu0 %v6292_v5, %s5801_s18 }
 0x721   : > { %4367 = vrot.lane.b32.xlu1 %v3110_v23, %s5807_s25  ;;  %4365 = vrot.lane.b32.xlu0 %v6292_v5, %s5807_s25 }
 0x725   : > { %4548 = vrot.lane.b32.xlu1 %v3110_v23, %s5794_s13  ;;  %4363 = vrot.lane.b32.xlu0 %v6286_v25, %s5807_s25 }
 0x729   : > { %3460 = vrot.lane.b32.xlu1 %v6292_v5, %s5802_s15  ;;  %4546 = vrot.lane.b32.xlu0 %v6292_v5, %s5794_s13 }
 0x72d   : > { %4544 = vrot.lane.b32.xlu1 %v6286_v25, %s5794_s13  ;;  %3458 = vrot.lane.b32.xlu0 %v6286_v25, %s5802_s15  ;;  %s5589_s15 = smul.u32 48, %s6621_s10 }
 0x72f   : > { %s332_s26 = scalar_lea.vmem %s6612_s9, %s5589_s15 }
 0x773   : > { %v6332_v36 = vpop.permute.xlu1 %3462  ;;  %v3124_v6 = vpop.permute.xlu0 %3123 }
 0x774   : > { %5376 = vmatprep.subr.msk.mxu0 %vm1445_vm14, %v3124_v6 }
 0x775   : > { %5377 = vmatpush3.msk.msra.mxu0 %vm1445_vm14, %v3124_v6 }
 0x776   : > { %5379 = vmatmul.mubr.msk.f32.vlgmr.msra.gmra.mrb[2].mxu0 %vm1441_vm15, %v6337_v7  ;;  %5381 = vmatprep.subr.msk.mxu0 %vm1445_vm14, %v3110_v23 }
 0x777   : > { %v3644_v9 = vpop.permute.xlu1 %3643  ;;  %5382 = vmatpush3.msk.msra.mxu0 %vm1445_vm14, %v3110_v23  ;;  %v3642_v10 = vpop.permute.xlu0 %3641  ;;  %5383 = vmatprep.mubr.msk.f32.mxu0 %vm1441_vm15, %v6343_v8 }
 0x778   : > { %5386 = vmatprep.subr.msk.mxu0 %vm1445_vm14, %v6332_v36  ;;  %v3646_v15 = vsel %vm2555_vm4, %v3642_v10, %v3644_v9 }
 0x77b   : > { %v3823_v11 = vpop.permute.xlu1 %3822  ;;  %v3640_v12 = vpop.permute.xlu0 %3639 }
 0x77c   : > { %v3645_v27 = vsel %vm2555_vm4, %v3640_v12, %v3642_v10 }
 0x77e   : > { %5384 = vmatmul.mubr.msk.f32.vlgmr.msra.gmra.mrb[2].mxu0 %vm1441_vm15, %v6357_v13 }
 0x77f   : > { %5387 = vmatpush3.msk.msra.mxu0 %vm1445_vm14, %v6332_v36  ;;  %v3821_v0 = vpop.permute.xlu1 %3820  ;;  %v3825_v17 = vpop.permute.xlu0 %3824  ;;  %5388 = vmatprep.mubr.msk.f32.mxu0 %vm1441_vm15, %v6362_v14 }
 0x780   : > { %5278 = vmatprep.subr.msk.mxu0 %vm1445_vm14, %v3646_v15  ;;  %v3827_v32 = vsel %vm2646_vm6, %v3823_v11, %v3825_v17  ;;  %v3826_v43 = vsel %vm2646_vm6, %v3821_v0, %v3823_v11 }
 0x783   : > { %v6372_v21 = vpop.permute.xlu1 %4005  ;;  %v4004_v24 = vpop.permute.xlu0 %4003 }
 0x784   : > { %v4008_v51 = vsel %vm2737_vm7, %v4004_v24, %v6372_v21 }
 0x786   : > { %5389 = vmatmul.mubr.msk.f32.vlgmr.msra.gmra.mrb[2].mxu0 %vm1441_vm15, %v6377_v26 }
 0x787   : > { %5279 = vmatpush1.msk.msra.mxu0 %vm1445_vm14, %v3645_v27  ;;  %v6383_v28 = vpop.permute.xlu1 %4184  ;;  %v4002_v29 = vpop.permute.xlu0 %4001  ;;  %3723 = vmatprep.mubr.f32.mxu0 %v6124_v16 }
 0x788   : > { %5391 = vmatprep.subr.msk.mxu0 %vm1445_vm14, %v3644_v9  ;;  %v4007_v58 = vsel %vm2737_vm7, %v4002_v29, %v4004_v24 }
 0x78a   : > { %5280 = vmatmul.mubr.msk.f32.vlgmr.msra.gmra.mrb[4].mxu0 %vm1441_vm15, %v5276_v30 }
 0x78b   : > { %5392 = vmatpush3.msk.msra.mxu0 %vm1445_vm14, %v3644_v9  ;;  %v6392_v31 = vpop.permute.xlu1 %4182  ;;  %v6395_v37 = vpop.permute.xlu0 %4186  ;;  %3729 = vmatprep.mubr.f32.mxu0 %v6124_v16 }
 0x78c   : > { %5287 = vmatprep.subr.msk.mxu0 %vm1445_vm14, %v3827_v32  ;;  %v4189_v62 = vsel %vm2828_vm8, %v6383_v28, %v6395_v37  ;;  %v4188_v34 = vsel %vm2828_vm8, %v6392_v31, %v6383_v28 }
 0x78e   : > { %5281 = vmatmul.mubr.msk.f32.gmra.mrb[6].mxu0 %vm1441_vm15, %v5277_v38 }
 0x78f   : > { %v3120_v39 = vpop.permute.xlu1 %3119  ;;  %v3122_v40 = vpop.permute.xlu0 %3121  ;;  %5393 = vmatprep.mubr.msk.f32.mxu0 %vm1441_vm15, %v5276_v30 }
 0x790   : > { %v3125_v41 = vsel %vm2295_vm9, %v3120_v39, %v3122_v40  ;;  %v3126_v42 = vsel %vm2295_vm9, %v3122_v40, %v3124_v6 }
 0x791   : > { %5253 = vmatprep.subr.msk.mxu1 %vm1445_vm14, %v3126_v42 }
 0x792   : > { %5254 = vmatpush1.msk.msra.mxu1 %vm1445_vm14, %v3125_v41  ;;  %5394 = vmatmul.mubr.msk.f32.vlgmr.msra.gmra.mrb[2].mxu0 %vm1441_vm15, %v5277_v38 }
 0x793   : > { %5288 = vmatpush1.msk.msra.mxu0 %vm1445_vm14, %v3826_v43  ;;  %v6411_v46 = vpop.permute.xlu1 %4367  ;;  %5255 = vmatmul.mubr.msk.f32.vlgmr.msra.gmra.mrb[4].mxu1 %vm1441_vm15, %v6278_v18  ;;  %v6415_v49 = vpop.permute.xlu0 %4365  ;;  %v5321_v18 = vld [vmem:[%s6607_s4 + $0x80] sm:$0xff] }
 0x794   : > { %5260 = vmatprep.subr.msk.mxu1 %vm1445_vm14, %v6292_v5  ;;  %5396 = vmatprep.subr.msk.mxu0 %vm1445_vm14, %v3825_v17  ;;  %v4370_v44 = vsel %vm2919_vm0, %v6415_v49, %v6411_v46 }
 0x795   : > { %5261 = vmatpush1.msk.msra.mxu1 %vm1445_vm14, %v6286_v25  ;;  %3904 = vmatprep.mubr.f32.mxu0 %v6124_v16 }
 0x796   : > { %3209 = vmatprep.mubr.f32.mxu1 %v6124_v16  ;;  %5289 = vmatmul.mubr.msk.f32.vlgmr.msra.gmra.mrb[4].mxu0 %vm1441_vm15, %v5285_v50 }
 0x797   : > { %5397 = vmatpush3.msk.msra.mxu0 %vm1445_vm14, %v3825_v17  ;;  %v6431_v52 = vpop.permute.xlu1 %4548  ;;  %5256 = vmatmul.mubr.msk.f32.gmra.mrb[6].mxu1 %vm1441_vm15, %v6337_v7  ;;  %v4364_v53 = vpop.permute.xlu0 %4363 }
 0x798   : > { %5296 = vmatprep.subr.msk.mxu0 %vm1445_vm14, %v4008_v51  ;;  %3910 = vmatprep.mubr.f32.mxu0 %v6124_v16 }
 0x799   : > { %3367 = vmatprep.mubr.f32.mxu1 %v6124_v16 }
 0x79a   : > { %5290 = vmatmul.mubr.msk.f32.gmra.mrb[6].mxu0 %vm1441_vm15, %v5286_v54 }
 0x79b   : > { %v3461_v55 = vpop.permute.xlu1 %3460  ;;  %5262 = vmatmul.mubr.msk.f32.vlgmr.msra.gmra.mrb[4].mxu1 %vm1441_vm15, %v6343_v8  ;;  %v6444_v56 = vpop.permute.xlu0 %4546  ;;  %5398 = vmatprep.mubr.msk.f32.mxu0 %vm1441_vm15, %v5285_v50  ;;  %v4778_v8 = vld [vmem:[%s6609_s6 + $0x8] sm:$0xff] }
 0x79c   : > { %v3465_v57 = vsel %vm2461_vm12, %v3461_v55, %v6332_v36  ;;  %3373 = vmatprep.mubr.f32.mxu1 %v6124_v16  ;;  %v4551_v1 = vsel %vm619_vm5, %v6444_v56, %v6431_v52 }
 0x79d   : > { %5269 = vmatprep.subr.msk.mxu1 %vm1445_vm14, %v3465_v57 }
 0x79e   : > { %5399 = vmatmul.mubr.msk.f32.vlgmr.msra.gmra.mrb[2].mxu0 %vm1441_vm15, %v5286_v54 }
 0x79f   : > { %5297 = vmatpush1.msk.msra.mxu0 %vm1445_vm14, %v4007_v58  ;;  %5263 = vmatmul.mubr.msk.f32.gmra.mrb[6].mxu1 %vm1441_vm15, %v6357_v13  ;;  %v3459_v59 = vpop.permute.xlu0 %3458  ;;  %v4545_v3 = vpop.permute.xlu1 %4544 }
 0x7a0   : > { %5401 = vmatprep.subr.msk.mxu0 %vm1445_vm14, %v6372_v21  ;;  %v3464_v61 = vsel %vm2461_vm12, %v3459_v59, %v3461_v55  ;;  %4085 = vmatprep.mubr.f32.mxu0 %v6124_v16  ;;  %v4550_v4 = vsel %vm619_vm5, %v4545_v3, %v6444_v56  ;;  %vm6616_vm5 = vcmask 556032  }
 0x7a1   : > { %5270 = vmatpush1.msk.msra.mxu1 %vm1445_vm14, %v3464_v61  ;;  %3542 = vmatprep.mubr.f32.mxu1 %v6124_v16  ;;  %vm6617_vm3 = vmmov %vm6616_vm5 }
 0x7a2   : > { %5298 = vmatmul.mubr.msk.f32.vlgmr.msra.gmra.mrb[4].mxu0 %vm1441_vm15, %v5294_v60  ;;  %5472 = vmatprep.subr.bf16.mxu1 %v5471_v35  ;;  %v5303_v35 = vld [vmem:[%s6607_s4 + $0x60] sm:$0xff] }
 0x7a3   : > { %5402 = vmatpush3.msk.msra.mxu0 %vm1445_vm14, %v6372_v21  ;;  %5271 = vmatmul.mubr.msk.f32.vlgmr.msra.gmra.mrb[4].mxu1 %vm1441_vm15, %v6362_v14 }
 0x7a4   : > { %5305 = vmatprep.subr.msk.mxu0 %vm1445_vm14, %v4189_v62  ;;  %5474 = vmatpush1.bf16.msra.mxu1 %v5473_v47  ;;  %v4369_v47 = vsel %vm2919_vm0, %v4364_v53, %v6415_v49  ;;  %vm4762_vm0 = vcmask 1047856   ;;  %v4769_v49 = vld [vmem:[%s6608_s5] sm:$0xff]  ;;  %v4770_v53 = vld [vmem:[%s6608_s5 + $0x8] sm:$0xff] }
 0x7a5   : > { %5476 = vmatprep.subr.bf16.mxu1 %v5918_v48  ;;  %4091 = vmatprep.mubr.f32.mxu0 %v6124_v16 }
 0x7a6   : > { %3548 = vmatprep.mubr.f32.mxu1 %v6124_v16  ;;  %5299 = vmatmul.mubr.msk.f32.gmra.mrb[6].mxu0 %vm1441_vm15, %v5295_v63 }
 0x7a7   : > { %5272 = vmatmul.mubr.msk.f32.gmra.mrb[6].mxu1 %vm1441_vm15, %v6377_v26  ;;  %5403 = vmatprep.mubr.msk.f32.mxu0 %vm1441_vm15, %v5294_v60 }
 0x7a8   : > { %4849 = vmatprep.mubr.f32.mxu1 %v6124_v16 }
 0x7aa   : > { %5404 = vmatmul.mubr.msk.f32.vlgmr.msra.gmra.mrb[2].mxu0 %vm1441_vm15, %v5295_v63 }
 0x7ab   : > { %5306 = vmatpush1.msk.msra.mxu0 %vm1445_vm14, %v4188_v34  ;;  %5330 = vmatmul.mubr.msk.f32.vlgmr.msra.gmra.mrb[8].mxu1 %vm397_vm1, %v4777_v33 }
 0x7ac   : > { %5406 = vmatprep.subr.msk.mxu0 %vm1445_vm14, %v6395_v37  ;;  %5478 = vmatpush3.bf16.msra.mxu1 %v5918_v48  ;;  %v5312_v48 = vld [vmem:[%s6607_s4 + $0x70] sm:$0xff] }
 0x7ad   : > { %4266 = vmatprep.mubr.f32.mxu0 %v6124_v16  ;;  %4855 = vmatprep.mubr.f32.mxu1 %v6124_v16 }
 0x7ae   : > { %5307 = vmatmul.mubr.msk.f32.vlgmr.msra.gmra.mrb[4].mxu0 %vm1441_vm15, %v5303_v35 }
 0x7af   : > { %5407 = vmatpush3.msk.msra.mxu0 %vm1445_vm14, %v6395_v37  ;;  %4272 = vmatprep.mubr.f32.mxu0 %v6124_v16 }
 0x7b0   : > { %5314 = vmatprep.subr.msk.mxu0 %vm1445_vm14, %v4370_v44  ;;  %5331 = vmatmul.mubr.msk.f32.gmra.mrb[10].mxu1 %vm397_vm1, %v4778_v8 }
 0x7b1   : > { %5425 = vmatprep.mubr.msk.f32.mxu1 %vm397_vm1, %v4777_v33 }
 0x7b2   : > { %5308 = vmatmul.mubr.msk.f32.gmra.mrb[6].mxu0 %vm1441_vm15, %v5304_v45 }
 0x7b3   : > { %5408 = vmatprep.mubr.msk.f32.mxu0 %vm1441_vm15, %v5303_v35 }
 0x7b4   : > { %5426 = vmatmul.mubr.msk.f32.vlgmr.msra.gmra.mrb[12].mxu1 %vm397_vm1, %v4778_v8 }
 0x7b5   : > { %5007 = vmatprep.mubr.f32.mxu1 %v6124_v16 }
 0x7b6   : > { %5409 = vmatmul.mubr.msk.f32.vlgmr.msra.gmra.mrb[2].mxu0 %vm1441_vm15, %v5304_v45 }
 0x7b7   : > { %5315 = vmatpush1.msk.msra.mxu0 %vm1445_vm14, %v4369_v47  ;;  %4447 = vmatprep.mubr.f32.mxu0 %v6124_v16 }
 0x7b8   : > { %5411 = vmatprep.subr.msk.mxu0 %vm1445_vm14, %v6411_v46 }
 0x7ba   : > { %5316 = vmatmul.mubr.msk.f32.vlgmr.msra.gmra.mrb[4].mxu0 %vm1441_vm15, %v5312_v48 }
 0x7bb   : > { %5412 = vmatpush3.msk.msra.mxu0 %vm1445_vm14, %v6411_v46  ;;  %4453 = vmatprep.mubr.f32.mxu0 %v6124_v16 }
 0x7bc   : > { %5323 = vmatprep.subr.msk.mxu0 %vm1445_vm14, %v4551_v1 }
 0x7be   : > { %5317 = vmatmul.mubr.msk.f32.gmra.mrb[6].mxu0 %vm1441_vm15, %v5313_v2 }
 0x7bf   : > { %5413 = vmatprep.mubr.msk.f32.mxu0 %vm1441_vm15, %v5312_v48 }
 0x7c2   : > { %5414 = vmatmul.mubr.msk.f32.vlgmr.msra.gmra.mrb[2].mxu0 %vm1441_vm15, %v5313_v2 }
 0x7c3   : > { %5324 = vmatpush1.msk.msra.mxu0 %vm1445_vm14, %v4550_v4  ;;  %4628 = vmatprep.mubr.f32.mxu0 %v6124_v16 }
 0x7c4   : > { %5416 = vmatprep.subr.msk.mxu0 %vm1445_vm14, %v6431_v52 }
 0x7c6   : > { %5325 = vmatmul.mubr.msk.f32.vlgmr.msra.gmra.mrb[4].mxu0 %vm1441_vm15, %v5321_v18 }
 0x7c7   : > { %5417 = vmatpush3.msk.msra.mxu0 %vm1445_vm14, %v6431_v52  ;;  %4634 = vmatprep.mubr.f32.mxu0 %v6124_v16 }
 0x7ca   : > { %5326 = vmatmul.mubr.msk.f32.gmra.mrb[6].mxu0 %vm1441_vm15, %v5322_v19 }
 0x7cb   : > { %5418 = vmatprep.mubr.msk.f32.mxu0 %vm1441_vm15, %v5321_v18 }
 0x7ce   : > { %5419 = vmatmul.mubr.msk.f32.vlgmr.msra.gmra.mrb[2].mxu0 %vm1441_vm15, %v5322_v19 }
 0x876   : > { %v3544_v20 = vpop.f32.mrb[4].mxu1 }
 0x877   : > { %v3546_v22 = vpop.f32.mrb[5].mxu1 }
 0x87a   : > { %v3550_v23 = vpop.f32.mrb[6].mxu1 }
 0x87b   : > { %v3552_v25 = vpop.f32.mrb[7].mxu1 }
 0x899   : > { %v4630_v5 = vpop.f32.mrb[4].mxu0 }
 0x89a   : > { %v5487_v36 = vadd.f32 %v4630_v5, %v3544_v20  ;;  %v4632_v6 = vpop.f32.mrb[5].mxu0 }
 0x89b   : > { %v5488_v7 = vadd.f32 %v4632_v6, %v3546_v22 }
 0x89c   : > { %v4722_v9 = vmax.f32 %v5487_v36, 0.0 }
 0x89d   : > { %v4723_v10 = vmax.f32 %v5488_v7, 0.0  ;;  %v4636_v11 = vpop.f32.mrb[6].mxu0 }
 0x89e   : > { %v5489_v12 = vadd.f32 %v4636_v11, %v3550_v23  ;;  %v4638_v13 = vpop.f32.mrb[7].mxu0  ;;  %4740 = vrot.lane.b32.xlu0 %v4722_v9, %s5781_s19 }
 0x89f   : > { %v5490_v14 = vadd.f32 %v4638_v13, %v3552_v25  ;;  %4742 = vrot.lane.b32.xlu1 %v4723_v10, %s5781_s19 }
 0x8a0   : > { %v4725_v15 = vmax.f32 %v5489_v12, 0.0 }
 0x8a1   : > { %v4726_v0 = vmax.f32 %v5490_v14, 0.0  ;;  %v5420_v17 = vpop.f32.mrb[2].mxu0 }
 0x8a2   : > { %v4707_v21 = vpop.f32.mrb[3].mxu0  ;;  %4746 = vrot.lane.b32.xlu0 %v4725_v15, %s5781_s19  ;;  %v4727_v26 = vmax.f32 %v5420_v17, 0.0 }
 0x8a3   : > { %v4724_v24 = vmax.f32 %v4707_v21, 0.0  ;;  %4748 = vrot.lane.b32.xlu1 %v4726_v0, %s5781_s19 }
 0x8a6   : > { %4744 = vrot.lane.b32.xlu0 %v4724_v24, %s5781_s19 }
 0x8a7   : > { %4750 = vrot.lane.b32.xlu1 %v4727_v26, %s5781_s19 }
 0x910   : > { %v4741_v27 = vpop.permute.xlu0 %4740 }
 0x911   : > { %4763 = vst.msk [vmem:[#allocation6] sm:$0xff] %vm4762_vm0, %v4741_v27  ;;  %v4743_v28 = vpop.permute.xlu1 %4742 }
 0x912   : > { %v4752_v29 = vsel %vm1419_vm2, %v4741_v27, %v4743_v28 }
 0x914   : > { %v4747_v30 = vpop.permute.xlu0 %4746 }
 0x915   : > { %4766 = vst.msk [vmem:[#allocation6 + $0x18] sm:$0xff] %vm4762_vm0, %v4747_v30  ;;  %v4749_v31 = vpop.permute.xlu1 %4748 }
 0x916   : > { %v4754_v32 = vsel %vm1419_vm2, %v4747_v30, %v4749_v31 }
 0x917   : > { %v5479_v37 = vpack.c.bf16 %v4754_v32, %v4752_v29 }
 0x918   : > { %v4745_v38 = vpop.permute.xlu0 %4744  ;;  %v4771_v42 = vld [vmem:[#allocation6] sm:$0xff] }
 0x919   : > { %v4753_v39 = vsel %vm1419_vm2, %v4743_v28, %v4745_v38  ;;  %v4751_v40 = vpop.permute.xlu1 %4750  ;;  %5480 = vmatprep.subr.bf16.mxu1 %v5479_v37 }
 0x91a   : > { %4765 = vst.msk [vmem:[#allocation6 + $0x10] sm:$0xff] %vm6616_vm5, %v4753_v39  ;;  %v4755_v41 = vsel %vm1419_vm2, %v4749_v31, %v4751_v40  ;;  %vm6618_vm2 = vmmov %vm6617_vm3 }
 0x91b   : > { %4768 = vst.msk [vmem:[#allocation6 + $0x28] sm:$0xff] %vm6617_vm3, %v4755_v41  ;;  %vm6619_vm13 = vmmov %vm6618_vm2 }
 0x91c   : > { %v4774_v43 = vld [vmem:[#allocation6 + $0x18] sm:$0xff] }
 0x91d   : > { %v5481_v46 = vpack.c.bf16 %v4774_v43, %v4771_v42 }
 0x91f   : > { %5482 = vmatpush1.bf16.msra.mxu1 %v5481_v46 }
 0x921   : > { %v4773_v50 = vld [vmem:[#allocation6 + $0x10] sm:$0xff] }
 0x922   : > { %5334 = vmatmul.mubr.msk.f32.vlgmr.msra.gmra.mrb[8].mxu1 %vm397_vm1, %v4769_v49  ;;  %v4776_v51 = vld [vmem:[#allocation6 + $0x28] sm:$0xff] }
 0x923   : > { %v5483_v52 = vpack.c.bf16 %v4776_v51, %v4773_v50  ;;  %5013 = vmatprep.mubr.f32.mxu1 %v6124_v16 }
 0x925   : > { %5484 = vmatprep.subr.bf16.mxu1 %v5483_v52 }
 0x926   : > { %5486 = vmatpush3.bf16.msra.mxu1 %v5483_v52 }
 0x927   : > { %5335 = vmatmul.mubr.msk.f32.gmra.mrb[10].mxu1 %vm397_vm1, %v4770_v53 }
 0x928   : > { %5432 = vmatprep.mubr.msk.f32.mxu1 %vm397_vm1, %v4769_v49 }
 0x92b   : > { %5433 = vmatmul.mubr.msk.f32.vlgmr.msra.gmra.mrb[12].mxu1 %vm397_vm1, %v4770_v53 }
 0x9f5   : > { %v5009_v54 = vpop.f32.mrb[8].mxu1 }
 0x9f6   : > { %5095 = vst [vmem:[%s332_s26] sm:$0xff] %v5009_v54  ;;  %v5011_v16 = vpop.f32.mrb[9].mxu1 }
 0x9f7   : > { %5096 = vst [vmem:[%s332_s26 + $0x8] sm:$0xff] %v5011_v16 }
 0x9fa   : > { %v5015_v55 = vpop.f32.mrb[10].mxu1 }
 0x9fb   : > { %5098 = vst [vmem:[%s332_s26 + $0x18] sm:$0xff] %v5015_v55  ;;  %v5017_v56 = vpop.f32.mrb[11].mxu1 }
 0x9fc   : > { %5099 = vst [vmem:[%s332_s26 + $0x20] sm:$0xff] %v5017_v56 }
 0x9fe   : > { %v5434_v57 = vpop.f32.mrb[12].mxu1 }
 0x9ff   : > { %5100 = vst.msk [vmem:[%s332_s26 + $0x28] sm:$0xff] %vm6618_vm2, %v5434_v57  ;;  %v5086_v58 = vpop.f32.mrb[13].mxu1 }
 0xa00   : > { %5097 = vst.msk [vmem:[%s332_s26 + $0x10] sm:$0xff] %vm6619_vm13, %v5086_v58 }
 0xa01 PF: > { %s19_s30 = sadd.s32 1, %s5774_s30  }
 0xa02   : > { %p16_p4 = scmp.ge.s32.totalorder %s19_s30, 4  }
 0xa04   :  { %18 = sbr.rel (!%p16_p4) target bundleno = 1 (0x1), region = 118 }

</bundles_post_ra>
